<compile_context>
chip_gen: v5e
topology: v5e:2x2
jax: 0.10.0
libtpu: 0.0.40
codegen_flags: <defaults>
</compile_context>

<pallas_src>
import math
import functools

import jax
import jax.numpy as jnp
from jax.experimental import pallas as pl
from jax.experimental.pallas import tpu as pltpu


def _self_attention_kernel(x_ref, nw_ref, nb_ref, qkvw_ref, qkvb_ref, ow_ref,
                           out_ref, key_ref, val_ref, ctx_ref, norm_ref,
                           *, heads, head_size, eps, softmax_scale, causal):
    S = x_ref.shape[1]
    H = x_ref.shape[2]

    x = x_ref[0].astype(jnp.float32)                        # (S, H)

    # ---- pre-layer-norm (DeepSpeed fuses this into qkv_gemm) ----
    mu = jnp.mean(x, axis=-1, keepdims=True)
    var = jnp.mean(jnp.square(x - mu), axis=-1, keepdims=True)
    xn = (x - mu) * jax.lax.rsqrt(var + eps)
    xn = xn * nw_ref[0].astype(jnp.float32) + nb_ref[0].astype(jnp.float32)
    norm_ref[0] = xn.astype(norm_ref.dtype)

    # ---- QKV projection: one (S,H)x(H,3H) MXU matmul ----
    qkv = jnp.dot(xn, qkvw_ref[...].astype(jnp.float32),
                  preferred_element_type=jnp.float32)
    qkv = qkv + qkvb_ref[0].astype(jnp.float32)             # (S, 3H)

    # Lane-dense K/V writeback (last dim = H, multiple of 128).  The
    # (B, heads, S, hd) present layout is produced in the wrapper.
    k_flat = qkv[:, H:2 * H]
    v_flat = qkv[:, 2 * H:]
    key_ref[0] = k_flat.astype(key_ref.dtype)
    val_ref[0] = v_flat.astype(val_ref.dtype)

    # ---- batched per-head attention (no Python head loop) ----
    def split_heads(t):                                     # (S, H) -> (heads, S, hd)
        return t.reshape(S, heads, head_size).transpose(1, 0, 2)

    # Both 1/norm_factor factors folded into a single scale on q.
    q = split_heads(qkv[:, :H] * softmax_scale)
    k = split_heads(k_flat)
    v = split_heads(v_flat)

    s = jnp.einsum('hqd,hkd->hqk', q, k,
                   preferred_element_type=jnp.float32)      # (heads, S, S)
    if causal:
        row = jax.lax.broadcasted_iota(jnp.int32, (S, S), 0)
        col = jax.lax.broadcasted_iota(jnp.int32, (S, S), 1)
        mask = jnp.broadcast_to((col <= row)[None, :, :], s.shape)
        s = jnp.where(mask, s, -1e9)                        # one mask, all heads

    s = s - jnp.max(s, axis=-1, keepdims=True)
    p = jnp.exp(s)
    p = p * pl.reciprocal(jnp.sum(p, axis=-1, keepdims=True), approx=True)

    ctx_h = jnp.einsum('hqk,hkd->hqd', p, v,
                       preferred_element_type=jnp.float32)  # (heads, S, hd)
    ctx = ctx_h.transpose(1, 0, 2).reshape(S, H)
    ctx_ref[0] = ctx.astype(ctx_ref.dtype)

    # ---- output projection (vector_matmul; attn_ob is added later in the MLP) ----
    out_ref[0] = jnp.dot(ctx, ow_ref[...].astype(jnp.float32),
                         preferred_element_type=jnp.float32).astype(out_ref.dtype)


def deepspeed_self_attention(x, norm_w, norm_b, attn_qkvw, attn_qkvb, attn_ow,
                             *, heads, eps=1e-5, triangular_masking=True):
    B, S, H = x.shape
    hd = H // heads
    # DeepSpeed scales q and k each by 1/hd**0.25 -> net 1/sqrt(hd) on the scores.
    softmax_scale = 1.0 / math.sqrt(hd)
    kernel = functools.partial(
        _self_attention_kernel, heads=heads, head_size=hd, eps=eps,
        softmax_scale=softmax_scale, causal=triangular_masking)

    dtype = x.dtype
    out_shapes = (
        jax.ShapeDtypeStruct((B, S, H), dtype),   # attention output
        jax.ShapeDtypeStruct((B, S, H), dtype),   # key   (lane-dense; reshaped below)
        jax.ShapeDtypeStruct((B, S, H), dtype),   # value (lane-dense; reshaped below)
        jax.ShapeDtypeStruct((B, S, H), dtype),   # context layer
        jax.ShapeDtypeStruct((B, S, H), dtype),   # inp_norm
    )

    bsh_spec = pl.BlockSpec((1, S, H), lambda b: (b, 0, 0))

    grid_spec = pltpu.PrefetchScalarGridSpec(
        num_scalar_prefetch=0,
        grid=(B,),
        in_specs=[
            bsh_spec,                                      # x
            pl.BlockSpec((1, H), lambda b: (0, 0)),        # norm_w
            pl.BlockSpec((1, H), lambda b: (0, 0)),        # norm_b
            pl.BlockSpec((H, 3 * H), lambda b: (0, 0)),    # attn_qkvw
            pl.BlockSpec((1, 3 * H), lambda b: (0, 0)),    # attn_qkvb
            pl.BlockSpec((H, H), lambda b: (0, 0)),        # attn_ow
        ],
        out_specs=[bsh_spec] * 5,
    )

    # Rough scoped-VMEM need (double-buffered blocks + fp32 intermediates),
    # clamped to a range that is safe on v5e/v6e (128 MiB) and v7x (64 MiB).
    elt = jnp.dtype(dtype).itemsize
    blocks = 2 * elt * (S * H            # x
                        + 2 * H          # norm_w, norm_b
                        + H * 3 * H      # qkv weight
                        + 3 * H          # qkv bias
                        + H * H          # output weight
                        + 5 * S * H)     # five outputs
    interm = 4 * (S * 3 * H + heads * S * S + 3 * S * H)
    vmem_limit = int(min(max(2 * (blocks + interm), 16 * 1024 * 1024),
                         48 * 1024 * 1024))

    outs = pl.pallas_call(
        kernel,
        out_shape=out_shapes,
        grid_spec=grid_spec,
        compiler_params=pltpu.CompilerParams(
            dimension_semantics=("parallel",),   # batch axis -> megacore on v7x
            vmem_limit_bytes=vmem_limit),
    )(x, norm_w.reshape(1, H), norm_b.reshape(1, H), attn_qkvw,
      attn_qkvb.reshape(1, 3 * H), attn_ow)

    output, key_flat, value_flat, ctx, inp_norm = outs
    # Cheap layout plumbing in XLA: present K/V as (B, heads, S, head_size).
    key = key_flat.reshape(B, S, heads, hd).transpose(0, 2, 1, 3)
    value = value_flat.reshape(B, S, heads, hd).transpose(0, 2, 1, 3)
    return output, key, value, ctx, inp_norm


def _reference(x, norm_w, norm_b, qkvw, qkvb, ow, heads, eps=1e-5, causal=True):
    B, S, H = x.shape
    hd = H // heads
    nf = math.sqrt(math.sqrt(hd))
    mu = jnp.mean(x, -1, keepdims=True)
    var = jnp.mean(jnp.square(x - mu), -1, keepdims=True)
    xn = (x - mu) * jax.lax.rsqrt(var + eps) * norm_w + norm_b
    qkv = xn @ qkvw + qkvb
    q, k, v = qkv[..., :H], qkv[..., H:2 * H], qkv[..., 2 * H:]

    def split_heads(t):
        return t.reshape(B, S, heads, hd).transpose(0, 2, 1, 3)

    qh, kh, vh = split_heads(q), split_heads(k), split_heads(v)
    s = jnp.einsum('bhqd,bhkd->bhqk', qh / nf, kh / nf)
    if causal:
        mask = jnp.tril(jnp.ones((S, S), dtype=bool))
        s = jnp.where(mask, s, -1e9)
    p = jax.nn.softmax(s, axis=-1)
    ctx = jnp.einsum('bhqk,bhkd->bhqd', p, vh).transpose(0, 2, 1, 3).reshape(B, S, H)
    return ctx @ ow, kh, vh, ctx, xn


if __name__ == "__main__":
    B, S, H, heads = 2, 8, 128, 4      # head_size = 32
    key = jax.random.PRNGKey(0)
    k0, k1, k2, k3, k4, k5 = jax.random.split(key, 6)

    x = jax.random.normal(k0, (B, S, H), jnp.float32)
    norm_w = 1.0 + 0.1 * jax.random.normal(k1, (H,), jnp.float32)
    norm_b = 0.02 * jax.random.normal(k2, (H,), jnp.float32)
    attn_qkvw = 0.05 * jax.random.normal(k3, (H, 3 * H), jnp.float32)
    attn_qkvb = 0.02 * jax.random.normal(k4, (3 * H,), jnp.float32)
    attn_ow = 0.05 * jax.random.normal(k5, (H, H), jnp.float32)
    # attn_ob exists on the module but is consumed later by the MLP residual-add,
    # not inside the attention forward itself.

    outs = deepspeed_self_attention(x, norm_w, norm_b, attn_qkvw, attn_qkvb,
                                    attn_ow, heads=heads)
    outs = jax.block_until_ready(outs)

    refs = _reference(x, norm_w, norm_b, attn_qkvw, attn_qkvb, attn_ow, heads)
    names = ["output", "key", "value", "context", "inp_norm"]
    for name, got, ref in zip(names, outs, refs):
        assert got.shape == ref.shape, (name, got.shape, ref.shape)
        assert jnp.allclose(got, ref, rtol=1e-2, atol=1e-2), (
            name, float(jnp.max(jnp.abs(got - ref))))

    print("KERNEL_OK")
</pallas_src>

<mosaic_0001>
module attributes {stable_mosaic.version = 11 : i64} {
  func.func @_self_attention_kernel(%arg0: i32, %arg1: memref<1x8x128xf32, #tpu.memory_space<vmem>>, %arg2: memref<1x128xf32, #tpu.memory_space<vmem>>, %arg3: memref<1x128xf32, #tpu.memory_space<vmem>>, %arg4: memref<128x384xf32, #tpu.memory_space<vmem>>, %arg5: memref<1x384xf32, #tpu.memory_space<vmem>>, %arg6: memref<128x128xf32, #tpu.memory_space<vmem>>, %arg7: memref<1x8x128xf32, #tpu.memory_space<vmem>>, %arg8: memref<1x8x128xf32, #tpu.memory_space<vmem>>, %arg9: memref<1x8x128xf32, #tpu.memory_space<vmem>>, %arg10: memref<1x8x128xf32, #tpu.memory_space<vmem>>, %arg11: memref<1x8x128xf32, #tpu.memory_space<vmem>>) attributes {dimension_semantics = [#tpu.dimension_semantics<parallel>], iteration_bounds = array<i64: 2>, scalar_prefetch = 0 : i64, scratch_operands = 0 : i64, tpu.core_type = #tpu.core_type<tc>, window_params = [{transform_indices = @transform_0, window_bounds = array<i64: 1, 8, 128>}, {pipeline_mode = #tpu.pipeline_mode<synchronous>, transform_indices = @transform_1, window_bounds = array<i64: 1, 128>}, {pipeline_mode = #tpu.pipeline_mode<synchronous>, transform_indices = @transform_2, window_bounds = array<i64: 1, 128>}, {pipeline_mode = #tpu.pipeline_mode<synchronous>, transform_indices = @transform_3, window_bounds = array<i64: 128, 384>}, {pipeline_mode = #tpu.pipeline_mode<synchronous>, transform_indices = @transform_4, window_bounds = array<i64: 1, 384>}, {pipeline_mode = #tpu.pipeline_mode<synchronous>, transform_indices = @transform_5, window_bounds = array<i64: 128, 128>}, {transform_indices = @transform_6, window_bounds = array<i64: 1, 8, 128>}, {transform_indices = @transform_7, window_bounds = array<i64: 1, 8, 128>}, {transform_indices = @transform_8, window_bounds = array<i64: 1, 8, 128>}, {transform_indices = @transform_9, window_bounds = array<i64: 1, 8, 128>}, {transform_indices = @transform_10, window_bounds = array<i64: 1, 8, 128>}]} {
    %c0 = arith.constant 0 : index
    %c0_0 = arith.constant 0 : index
    %c0_1 = arith.constant 0 : index
    %0 = vector.load %arg1[%c0, %c0_0, %c0_1] : memref<1x8x128xf32, #tpu.memory_space<vmem>>, vector<1x8x128xf32>
    %1 = vector.shape_cast %0 : vector<1x8x128xf32> to vector<8x128xf32>
    %cst = arith.constant dense<0.000000e+00> : vector<8xf32>
    %2 = vector.multi_reduction <add>, %1, %cst [1] : vector<8x128xf32> to vector<8xf32>
    %3 = vector.shape_cast %2 : vector<8xf32> to vector<8x1xf32>
    %cst_2 = arith.constant 1.280000e+02 : f32
    %4 = vector.broadcast %cst_2 : f32 to vector<8x1xf32>
    %5 = arith.divf %3, %4 : vector<8x1xf32>
    %6 = vector.broadcast %5 : vector<8x1xf32> to vector<8x128xf32>
    %7 = arith.subf %1, %6 : vector<8x128xf32>
    %8 = arith.mulf %7, %7 : vector<8x128xf32>
    %cst_3 = arith.constant dense<0.000000e+00> : vector<8xf32>
    %9 = vector.multi_reduction <add>, %8, %cst_3 [1] : vector<8x128xf32> to vector<8xf32>
    %10 = vector.shape_cast %9 : vector<8xf32> to vector<8x1xf32>
    %cst_4 = arith.constant 1.280000e+02 : f32
    %11 = vector.broadcast %cst_4 : f32 to vector<8x1xf32>
    %12 = arith.divf %10, %11 : vector<8x1xf32>
    %13 = vector.broadcast %5 : vector<8x1xf32> to vector<8x128xf32>
    %14 = arith.subf %1, %13 : vector<8x128xf32>
    %cst_5 = arith.constant 9.99999974E-6 : f32
    %15 = vector.broadcast %cst_5 : f32 to vector<8x1xf32>
    %16 = arith.addf %12, %15 : vector<8x1xf32>
    %17 = math.rsqrt %16 : vector<8x1xf32>
    %18 = vector.broadcast %17 : vector<8x1xf32> to vector<8x128xf32>
    %19 = arith.mulf %14, %18 : vector<8x128xf32>
    %c0_6 = arith.constant 0 : index
    %c0_7 = arith.constant 0 : index
    %20 = vector.load %arg2[%c0_6, %c0_7] : memref<1x128xf32, #tpu.memory_space<vmem>>, vector<1x128xf32>
    %21 = vector.shape_cast %20 : vector<1x128xf32> to vector<128xf32>
    %22 = vector.shape_cast %21 : vector<128xf32> to vector<1x128xf32>
    %23 = vector.broadcast %22 : vector<1x128xf32> to vector<8x128xf32>
    %24 = arith.mulf %19, %23 : vector<8x128xf32>
    %c0_8 = arith.constant 0 : index
    %c0_9 = arith.constant 0 : index
    %25 = vector.load %arg3[%c0_8, %c0_9] : memref<1x128xf32, #tpu.memory_space<vmem>>, vector<1x128xf32>
    %26 = vector.shape_cast %25 : vector<1x128xf32> to vector<128xf32>
    %27 = vector.shape_cast %26 : vector<128xf32> to vector<1x128xf32>
    %28 = vector.broadcast %27 : vector<1x128xf32> to vector<8x128xf32>
    %29 = arith.addf %24, %28 : vector<8x128xf32>
    %c0_10 = arith.constant 0 : index
    %c0_11 = arith.constant 0 : index
    %c0_12 = arith.constant 0 : index
    %30 = vector.load %arg11[%c0_10, %c0_11, %c0_12] : memref<1x8x128xf32, #tpu.memory_space<vmem>>, vector<1x8x128xf32>
    %31 = vector.shape_cast %30 : vector<1x8x128xf32> to vector<8x128xf32>
    %32 = vector.shape_cast %29 : vector<8x128xf32> to vector<1x8x128xf32>
    tpu.vector_store %arg11[%c0_10, %c0_11, %c0_12], %32 {strides = array<i32>} : memref<1x8x128xf32, #tpu.memory_space<vmem>>, vector<1x8x128xf32>,
    %c0_13 = arith.constant 0 : index
    %c0_14 = arith.constant 0 : index
    %33 = vector.load %arg4[%c0_13, %c0_14] : memref<128x384xf32, #tpu.memory_space<vmem>>, vector<128x384xf32>
    %cst_15 = arith.constant dense<0.000000e+00> : vector<8x384xf32>
    %34 = tpu.matmul %29, %33, %cst_15 {dimension_numbers = #tpu.dot_dimension_numbers<[1], [0], [0], [1], [0, 0, 1, 1], [], []>} : vector<8x128xf32>, vector<128x384xf32>, vector<8x384xf32> -> vector<8x384xf32>
    %c0_16 = arith.constant 0 : index
    %c0_17 = arith.constant 0 : index
    %35 = vector.load %arg5[%c0_16, %c0_17] : memref<1x384xf32, #tpu.memory_space<vmem>>, vector<1x384xf32>
    %36 = vector.shape_cast %35 : vector<1x384xf32> to vector<384xf32>
    %37 = vector.shape_cast %36 : vector<384xf32> to vector<1x384xf32>
    %38 = vector.broadcast %37 : vector<1x384xf32> to vector<8x384xf32>
    %39 = arith.addf %34, %38 : vector<8x384xf32>
    %40 = vector.extract_strided_slice %39 {offsets = [0, 128], sizes = [8, 128], strides = [1, 1]} : vector<8x384xf32> to vector<8x128xf32>
    %41 = vector.extract_strided_slice %39 {offsets = [0, 256], sizes = [8, 128], strides = [1, 1]} : vector<8x384xf32> to vector<8x128xf32>
    %c0_18 = arith.constant 0 : index
    %c0_19 = arith.constant 0 : index
    %c0_20 = arith.constant 0 : index
    %42 = vector.load %arg8[%c0_18, %c0_19, %c0_20] : memref<1x8x128xf32, #tpu.memory_space<vmem>>, vector<1x8x128xf32>
    %43 = vector.shape_cast %42 : vector<1x8x128xf32> to vector<8x128xf32>
    %44 = vector.shape_cast %40 : vector<8x128xf32> to vector<1x8x128xf32>
    tpu.vector_store %arg8[%c0_18, %c0_19, %c0_20], %44 {strides = array<i32>} : memref<1x8x128xf32, #tpu.memory_space<vmem>>, vector<1x8x128xf32>,
    %c0_21 = arith.constant 0 : index
    %c0_22 = arith.constant 0 : index
    %c0_23 = arith.constant 0 : index
    %45 = vector.load %arg9[%c0_21, %c0_22, %c0_23] : memref<1x8x128xf32, #tpu.memory_space<vmem>>, vector<1x8x128xf32>
    %46 = vector.shape_cast %45 : vector<1x8x128xf32> to vector<8x128xf32>
    %47 = vector.shape_cast %41 : vector<8x128xf32> to vector<1x8x128xf32>
    tpu.vector_store %arg9[%c0_21, %c0_22, %c0_23], %47 {strides = array<i32>} : memref<1x8x128xf32, #tpu.memory_space<vmem>>, vector<1x8x128xf32>,
    %48 = vector.extract_strided_slice %39 {offsets = [0, 0], sizes = [8, 128], strides = [1, 1]} : vector<8x384xf32> to vector<8x128xf32>
    %cst_24 = arith.constant 0.176776692 : f32
    %49 = vector.broadcast %cst_24 : f32 to vector<8x128xf32>
    %50 = arith.mulf %48, %49 : vector<8x128xf32>
    %51 = vector.shape_cast %50 : vector<8x128xf32> to vector<8x4x32xf32>
    %52 = tpu.transpose %51, [1, 0, 2] : vector<8x4x32xf32> -> vector<4x8x32xf32>
    %53 = vector.shape_cast %40 : vector<8x128xf32> to vector<8x4x32xf32>
    %54 = tpu.transpose %53, [1, 0, 2] : vector<8x4x32xf32> -> vector<4x8x32xf32>
    %55 = vector.shape_cast %41 : vector<8x128xf32> to vector<8x4x32xf32>
    %56 = tpu.transpose %55, [1, 0, 2] : vector<8x4x32xf32> -> vector<4x8x32xf32>
    "tpu.trace_start"() <{level = 10 : i32, message = "hqd,hkd->hqk"}> : () -> ()
    %cst_25 = arith.constant dense<0.000000e+00> : vector<4x8x8xf32>
    %57 = tpu.matmul %52, %54, %cst_25 {dimension_numbers = #tpu.dot_dimension_numbers<[2], [2], [1], [1], [0, 0, 0, 1, 1, 1], [0], [0]>} : vector<4x8x32xf32>, vector<4x8x32xf32>, vector<4x8x8xf32> -> vector<4x8x8xf32>
    "tpu.trace_stop"() : () -> ()
    %58 = tpu.iota {dimensions = array<i32: 0>} : vector<8x8xi32>
    %59 = tpu.iota {dimensions = array<i32: 1>} : vector<8x8xi32>
    %60 = arith.cmpi sle, %59, %58 : vector<8x8xi32>
    %61 = vector.shape_cast %60 : vector<8x8xi1> to vector<1x8x8xi1>
    %62 = vector.shape_cast %61 : vector<1x8x8xi1> to vector<1x8x8xi1>
    %63 = vector.broadcast %62 : vector<1x8x8xi1> to vector<4x8x8xi1>
    %cst_26 = arith.constant -1.000000e+09 : f32
    %64 = vector.broadcast %cst_26 : f32 to vector<4x8x8xf32>
    %65 = arith.select %63, %57, %64 : vector<4x8x8xi1>, vector<4x8x8xf32>
    %cst_27 = arith.constant dense<0xFF800000> : vector<4x8xf32>
    %66 = vector.multi_reduction <maximumf>, %65, %cst_27 [2] : vector<4x8x8xf32> to vector<4x8xf32>
    %67 = vector.shape_cast %66 : vector<4x8xf32> to vector<4x8x1xf32>
    %68 = vector.broadcast %67 : vector<4x8x1xf32> to vector<4x8x8xf32>
    %69 = arith.subf %65, %68 : vector<4x8x8xf32>
    %70 = math.exp %69 : vector<4x8x8xf32>
    %cst_28 = arith.constant dense<0.000000e+00> : vector<4x8xf32>
    %71 = vector.multi_reduction <add>, %70, %cst_28 [2] : vector<4x8x8xf32> to vector<4x8xf32>
    %72 = vector.shape_cast %71 : vector<4x8xf32> to vector<4x8x1xf32>
    %73 = tpu.reciprocal %72 {approx = true} : vector<4x8x1xf32> -> vector<4x8x1xf32>
    %74 = vector.broadcast %73 : vector<4x8x1xf32> to vector<4x8x8xf32>
    %75 = arith.mulf %70, %74 : vector<4x8x8xf32>
    "tpu.trace_start"() <{level = 10 : i32, message = "hqk,hkd->hqd"}> : () -> ()
    %cst_29 = arith.constant dense<0.000000e+00> : vector<4x8x32xf32>
    %76 = tpu.matmul %75, %56, %cst_29 {dimension_numbers = #tpu.dot_dimension_numbers<[2], [1], [1], [2], [0, 0, 0, 1, 1, 2], [0], [0]>} : vector<4x8x8xf32>, vector<4x8x32xf32>, vector<4x8x32xf32> -> vector<4x8x32xf32>
    "tpu.trace_stop"() : () -> ()
    %77 = tpu.transpose %76, [1, 0, 2] : vector<4x8x32xf32> -> vector<8x4x32xf32>
    %78 = vector.shape_cast %77 : vector<8x4x32xf32> to vector<8x128xf32>
    %c0_30 = arith.constant 0 : index
    %c0_31 = arith.constant 0 : index
    %c0_32 = arith.constant 0 : index
    %79 = vector.load %arg10[%c0_30, %c0_31, %c0_32] : memref<1x8x128xf32, #tpu.memory_space<vmem>>, vector<1x8x128xf32>
    %80 = vector.shape_cast %79 : vector<1x8x128xf32> to vector<8x128xf32>
    %81 = vector.shape_cast %78 : vector<8x128xf32> to vector<1x8x128xf32>
    tpu.vector_store %arg10[%c0_30, %c0_31, %c0_32], %81 {strides = array<i32>} : memref<1x8x128xf32, #tpu.memory_space<vmem>>, vector<1x8x128xf32>,
    %c0_33 = arith.constant 0 : index
    %c0_34 = arith.constant 0 : index
    %82 = vector.load %arg6[%c0_33, %c0_34] : memref<128x128xf32, #tpu.memory_space<vmem>>, vector<128x128xf32>
    %cst_35 = arith.constant dense<0.000000e+00> : vector<8x128xf32>
    %83 = tpu.matmul %78, %82, %cst_35 {dimension_numbers = #tpu.dot_dimension_numbers<[1], [0], [0], [1], [0, 0, 1, 1], [], []>} : vector<8x128xf32>, vector<128x128xf32>, vector<8x128xf32> -> vector<8x128xf32>
    %c0_36 = arith.constant 0 : index
    %c0_37 = arith.constant 0 : index
    %c0_38 = arith.constant 0 : index
    %84 = vector.load %arg7[%c0_36, %c0_37, %c0_38] : memref<1x8x128xf32, #tpu.memory_space<vmem>>, vector<1x8x128xf32>
    %85 = vector.shape_cast %84 : vector<1x8x128xf32> to vector<8x128xf32>
    %86 = vector.shape_cast %83 : vector<8x128xf32> to vector<1x8x128xf32>
    tpu.vector_store %arg7[%c0_36, %c0_37, %c0_38], %86 {strides = array<i32>} : memref<1x8x128xf32, #tpu.memory_space<vmem>>, vector<1x8x128xf32>,
    return
  }
  func.func @transform_0(%arg0: i32) -> (i32, i32, i32) {
    %c0_i32 = arith.constant 0 : i32
    %c0_i32_0 = arith.constant 0 : i32
    %c0_i32_1 = arith.constant 0 : i32
    return %arg0, %c0_i32, %c0_i32_0 : i32, i32, i32
  }
  func.func @transform_1(%arg0: i32) -> (i32, i32) {
    %c0_i32 = arith.constant 0 : i32
    %c0_i32_0 = arith.constant 0 : i32
    %c0_i32_1 = arith.constant 0 : i32
    return %c0_i32, %c0_i32_0 : i32, i32
  }
  func.func @transform_2(%arg0: i32) -> (i32, i32) {
    %c0_i32 = arith.constant 0 : i32
    %c0_i32_0 = arith.constant 0 : i32
    %c0_i32_1 = arith.constant 0 : i32
    return %c0_i32, %c0_i32_0 : i32, i32
  }
  func.func @transform_3(%arg0: i32) -> (i32, i32) {
    %c0_i32 = arith.constant 0 : i32
    %c0_i32_0 = arith.constant 0 : i32
    %c0_i32_1 = arith.constant 0 : i32
    return %c0_i32, %c0_i32_0 : i32, i32
  }
  func.func @transform_4(%arg0: i32) -> (i32, i32) {
    %c0_i32 = arith.constant 0 : i32
    %c0_i32_0 = arith.constant 0 : i32
    %c0_i32_1 = arith.constant 0 : i32
    return %c0_i32, %c0_i32_0 : i32, i32
  }
  func.func @transform_5(%arg0: i32) -> (i32, i32) {
    %c0_i32 = arith.constant 0 : i32
    %c0_i32_0 = arith.constant 0 : i32
    %c0_i32_1 = arith.constant 0 : i32
    return %c0_i32, %c0_i32_0 : i32, i32
  }
  func.func @transform_6(%arg0: i32) -> (i32, i32, i32) {
    %c0_i32 = arith.constant 0 : i32
    %c0_i32_0 = arith.constant 0 : i32
    %c0_i32_1 = arith.constant 0 : i32
    return %arg0, %c0_i32, %c0_i32_0 : i32, i32, i32
  }
  func.func @transform_7(%arg0: i32) -> (i32, i32, i32) {
    %c0_i32 = arith.constant 0 : i32
    %c0_i32_0 = arith.constant 0 : i32
    %c0_i32_1 = arith.constant 0 : i32
    return %arg0, %c0_i32, %c0_i32_0 : i32, i32, i32
  }
  func.func @transform_8(%arg0: i32) -> (i32, i32, i32) {
    %c0_i32 = arith.constant 0 : i32
    %c0_i32_0 = arith.constant 0 : i32
    %c0_i32_1 = arith.constant 0 : i32
    return %arg0, %c0_i32, %c0_i32_0 : i32, i32, i32
  }
  func.func @transform_9(%arg0: i32) -> (i32, i32, i32) {
    %c0_i32 = arith.constant 0 : i32
    %c0_i32_0 = arith.constant 0 : i32
    %c0_i32_1 = arith.constant 0 : i32
    return %arg0, %c0_i32, %c0_i32_0 : i32, i32, i32
  }
  func.func @transform_10(%arg0: i32) -> (i32, i32, i32) {
    %c0_i32 = arith.constant 0 : i32
    %c0_i32_0 = arith.constant 0 : i32
    %c0_i32_1 = arith.constant 0 : i32
    return %arg0, %c0_i32, %c0_i32_0 : i32, i32, i32
  }
}

</mosaic_0001>

<bundles_post_ra>
// kernel: tpu_custom_call.1
= control target key start
LH: loop header
LB: loop body
LE: loop exit
PB: predicated region body
PF: predicated region fallthrough
CT: control target
= control target key end

     0   :  { %s2830_s0 = inlined_call_operand.hbm [shape: f32[2,8,128], index: 0, kind: input, shape index: {}]   ;;  %s2831_s1 = inlined_call_operand.hbm [shape: f32[1,128], index: 1, kind: input, shape index: {}]   ;;  %s2832_s2 = inlined_call_operand.hbm [shape: f32[1,128], index: 2, kind: input, shape index: {}]   ;;  %s2833_s3 = inlined_call_operand.hbm [shape: f32[128,384], index: 3, kind: input, shape index: {}]   ;;  %s2834_s4 = inlined_call_operand.vmem [shape: f32[1,384], index: 4, kind: input, shape index: {}]   ;;  %s2835_s5 = inlined_call_operand.hbm [shape: f32[128,128], index: 5, kind: input, shape index: {}]   ;;  %s2836_s6 = inlined_call_operand.hbm [shape: f32[2,8,128], index: 6, kind: output, shape index: {0}]   ;;  %s2837_s7 = inlined_call_operand.hbm [shape: f32[2,8,128], index: 7, kind: output, shape index: {1}]   ;;  %s2838_s8 = inlined_call_operand.hbm [shape: f32[2,8,128], index: 8, kind: output, shape index: {2}]   ;;  %s2839_s9 = inlined_call_operand.hbm [shape: f32[2,8,128], index: 9, kind: output, shape index: {3}]   ;;  %s2840_s10 = inlined_call_operand.hbm [shape: f32[2,8,128], index: 10, kind: output, shape index: {4}]  }
   0x1   :  { %2844 = sst [smem:[#allocation25_spill]] %s2830_s0 }
   0x2   :  { %2845 = sst [smem:[#allocation26_spill]] %s2831_s1 }
   0x3   :  { %2846 = sst [smem:[#allocation27_spill]] %s2832_s2 }
   0x4   :  { %2847 = sst [smem:[#allocation28_spill]] %s2833_s3 }
   0x5   :  { %2848 = sst [smem:[#allocation29_spill]] %s2834_s4 }
   0x6   :  { %2849 = sst [smem:[#allocation30_spill]] %s2835_s5 }
   0x7   :  { %2850 = sst [smem:[#allocation31_spill]] %s2837_s7 }
   0x8   :  { %16 = vsyncpa [#allocation3], 0 }
   0x9   :  { %18 = vsyncpa [#allocation3 + $0x1], 0 }
   0xa   :  { %19 = vsyncpa [#allocation6], 0 }
   0xb   :  { %20 = vsyncpa [#allocation9], 0 }
   0xc   :  { %21 = vsyncpa [#allocation4], 0 }
   0xd   :  { %23 = vsyncpa [#allocation4 + $0x1], 0 }
   0xe   :  { %24 = vsyncpa [#allocation13], 0 }
   0xf   :  { %26 = vsyncpa [#allocation13 + $0x1], 0 }
  0x10   :  { %27 = vsyncpa [#allocation16], 0 }
  0x11   :  { %29 = vsyncpa [#allocation16 + $0x1], 0  ;;  %s2335_s13 = smov 0   ;;  %s2337_s14 = smov 0  }
  0x12   :  { %s2339_s15 = smov 0   ;;  %s2341_s16 = smov 0  }
  0x13 LB: > { %s2851_s1 = sld [smem:[#allocation26_spill]]  ;;  %s2359_s20 = sadd.s32 4294967295, %s2264_s16   ;;  %s2264_s16 = sphi %s2341_s16, %s2874_s16   ;;  %s2260_s15 = sphi %s2339_s15, %s2873_s15   ;;  %s2256_s14 = sphi %s2337_s14, %s2872_s14   ;;  %s2252_s13 = sphi %s2335_s13, %s2871_s13  }
  0x14   : > { %p1738_p0 = scmp.ge.s32.totalorder %s2264_s16, 1  ;;  %p56_p1 = scmp.eq.s32.totalorder %s2359_s20, 0 }
  0x15   : > { %p301_p2 = scmp.lt.s32.totalorder %s2264_s16, 3  ;;  %s2266_s22 = smov [#allocation5]  }
  0x16   : > { %s315_s23 = sshll.u32 %s2266_s22, 4  ;;  %s2853_s3 = sld [smem:[#allocation28_spill]]  ;;  %s316_s23 = int_to_ptr.vmem [resolvable:$true] %s315_s23 }
  0x17   : > { %p2364_p3 = pnand %p1738_p0, %p301_p2  ;;  %s2267_s28 = smov [#allocation8]  }
  0x18   : > { %s338_s29 = sshll.u32 %s2267_s28, 4  ;;  %s2268_s30 = smov 384   ;;  %s339_s29 = int_to_ptr.vmem [resolvable:$true] %s338_s29 }
  0x19   : > { %s313_s19 = sshll.u32 %s2851_s1, 4  ;;  %p1809_p5 = pneg %p2364_p3  ;;  %s314_s19 = int_to_ptr.hbm [resolvable:$true] %s313_s19 }
  0x1a   : > { %s2269_s11 = smov 24   ;;  %s2855_s2 = sld [smem:[#allocation27_spill]] }
  0x1b   : > { %p2376_p6 = pnand %p1809_p5, %p56_p1  ;;  %s2270_s22 = smov [#allocation7]  }
  0x1c   : > { %s336_s26 = sshll.u32 %s2853_s3, 4  ;;  %s327_s24 = sshll.u32 %s2270_s22, 4  ;;  %s337_s26 = int_to_ptr.hbm [resolvable:$true] %s336_s26  ;;  %s328_s24 = int_to_ptr.vmem [resolvable:$true] %s327_s24 }
  0x1d   : > { %1812 = dma.hbm_to_vmem [thread:$0]  (!%p2376_p6), %s314_s19, 16, %s316_s23, [#allocation6]  }
  0x1e   : > { %1818 = dma.hbm_to_vmem [thread:$0]  (!%p2376_p6), %s337_s26, 6144, %s339_s29, [#allocation9], %s2268_s30, %s2268_s30, %s2269_s11  }
  0x1f   : > { %s2856_s5 = sld [smem:[#allocation30_spill]]  ;;  %s2271_s26 = smov [#allocation10]  }
  0x20   : > { %s325_s18 = sshll.u32 %s2855_s2, 4  ;;  %s355_s28 = sshll.u32 %s2271_s26, 4  ;;  %s326_s18 = int_to_ptr.hbm [resolvable:$true] %s325_s18  ;;  %s356_s28 = int_to_ptr.vmem [resolvable:$true] %s355_s28 }
  0x21   : > { %1815 = dma.hbm_to_vmem [thread:$0]  (!%p2376_p6), %s326_s18, 16, %s328_s24, [#allocation6]  }
  0x22   : > { %s2272_s29 = smov 128   ;;  %s2273_s30 = smov 8  }
  0x23   : > { %s2841_s11 = sadd.s32 4294967294, %s2264_s16   ;;  %s2396_s12 = sadd.s32 1, %s2264_s16  }
  0x24   : > { %s39_s17 = ssub.s32 %s2264_s16, %s2396_s12  ;;  %s42_s18 = sadd.s32 1, %s2260_s15 }
  0x25   : > { %s353_s25 = sshll.u32 %s2856_s5, 4  ;;  %p40_p7 = scmp.eq.s32.totalorder %s39_s17, 0  ;;  %s354_s25 = int_to_ptr.hbm [resolvable:$true] %s353_s25 }
  0x26   : > { %1821 = dma.hbm_to_vmem [thread:$0]  (!%p2376_p6), %s354_s25, 2048, %s356_s28, [#allocation9], %s2272_s29, %s2272_s29, %s2273_s30  }
  0x27   : > { %p49_p8 = scmp.ne.s32.totalorder %s2260_s15, %s2256_s14  ;;  %p50_p9 = scmp.eq.s32.totalorder %s2264_s16, 0 }
  0x28   : > { %p55_p10 = scmp.ne.s32.totalorder %s2256_s14, %s2252_s13  ;;  %p184_p13 = scmp.eq.s32.totalorder %s2359_s20, 1 }
  0x29   : > { %s2407_s22 = scalar_select %p40_p7, %s2260_s15, %s42_s18  }
  0x2a   : > { %p2409_p11 = por %p50_p9, %p49_p8  ;;  %p2415_p12 = por %p56_p1, %p55_p10 }
  0x2b   : > { %2857 = sst [smem:[#allocation24_spill]] %s2407_s22  ;;  %p190_p0 = scmp.eq.s32.totalorder %s2841_s11, 1 }
  0x2c   : > { %p1846_p2 = scmp.lt.s32.totalorder %s2264_s16, 2  ;;  %s369_s19 = sand.u32 1, %s2260_s15  }
  0x2d   : > { %p2424_p5 = por %p184_p13, %p49_p8  ;;  %p2428_p6 = por %p190_p0, %p55_p10 }
  0x2e   : > { %s1744_s26 = sshll.u32 %s369_s19, 3  ;;  %s1745_s28 = sshll.u32 %s2264_s16, 3 }
  0x2f   : > { %s2862_s0 = sld [smem:[#allocation25_spill]]  ;;  %s373_s18 = scalar_lea.vmem [#allocation2], %s1744_s26 }
  0x30   : > { %s381_s1 = sshll.u32 %s373_s18, 4  ;;  %p2438_p7 = pnand %p1846_p2, %p2409_p11  ;;  %s382_s1 = int_to_ptr.vmem [resolvable:$true] %s381_s1 }
  0x31   : > { %s370_s3 = scalar_lea.sflag [#allocation3], %s369_s19 }
  0x32   : > { %p2044_p9 = pneg %p2438_p7 }
  0x35   : > { %s377_s17 = scalar_lea.hbm %s2862_s0, %s1745_s28  ;;  %s2047_s29 = scalar_lea.hbm %s2862_s0, 16 }
  0x36   : > { %s379_s2 = sshll.u32 %s377_s17, 4  ;;  %s380_s2 = int_to_ptr.hbm [resolvable:$true] %s379_s2 }
  0x37   : > { %s2040_s5 = sshra.s32 %s380_s2, 4  ;;  %s2041_s5 = int_to_ptr.hbm [resolvable:$true] %s2040_s5 }
  0x38   : > { %s2042_s22 = scalar_lea.hbm %s2041_s5, 8  ;;  %p2048_p11 = scmp.lt.s32.totalorder %s2041_s5, %s2862_s0 }
  0x39   : > { %p2043_p8 = scmp.ne.s32.totalorder %s2041_s5, %s2042_s22  ;;  %p2049_p0 = scmp.lt.s32.totalorder %s2047_s29, %s2042_s22 }
  0x3b   : > { %p2045_p10 = pnand %p2044_p9, %p2043_p8  ;;  %p2050_p2 = por %p2049_p0, %p2048_p11 }
  0x3d   : > { %p2046_p13 = pneg %p2045_p10 }
  0x3f   : > { %p2051_p4 = pnand %p2050_p2, %p2046_p13 }
  0x41   : > { %2054 = shalt.err (!%p2051_p4)
}
  0x42   : > { %1825 = dma.hbm_to_vmem [thread:$0]  (!%p2438_p7), %s380_s2, 128, %s382_s1, %s370_s3  }
  0x43   : > { %390 = sbr.rel (%p2364_p3) target bundleno = 1424 (0x590), region = 44  ;;  %s2455_s19 = sand.u32 (!%p2364_p3), 1, %s2256_s14  }
  0x44   : > { %s2458_s17 = sshll.u32 (!%p2364_p3), %s2455_s19, 3  ;;  %s393_s5 = scalar_lea.sflag (!%p2364_p3), [#allocation3], %s2455_s19 }
  0x45   : > { %s396_s22 = scalar_lea.vmem (!%p2364_p3), [#allocation2], %s2458_s17 }
  0x48   : > { %2227 = dma.done.wait (%p2415_p12), %s393_s5, 128  }
  0x49   : > { %2229 = vsyncadd (%p2415_p12), %s393_s5, 4294967168 }
  0x4a   : > { %2231 = dma.done.wait (%p56_p1), [#allocation6], 32  }
  0x4b   : > { %2233 = vsyncadd (%p56_p1), [#allocation6], 4294967264 }
  0x4c   : > { %2235 = dma.done.wait (%p56_p1), [#allocation9], 8192  }
  0x4d   : > { %2237 = vsyncadd (%p56_p1), [#allocation9], 4294959104  ;;  %v474_v0 = vld [vmem:[%s396_s22] sm:$0xff]  ;;  %v2274_v1 = vmov 128.0   ;;  %v557_v7 = vld [vmem:[#allocation8 + $0x160] sm:$0xff]  ;;  %s2842_s1 = scalar_lea.vmem [#allocation17], %s2458_s17 }
  0x4e   : > { %475 = vadd.xlane.f32.xlu0 %v474_v0  ;;  %1900 = vrcp.f32 %v2274_v1  ;;  %v558_v2 = vld [vmem:[#allocation8 + $0x168] sm:$0xff]  ;;  %v559_v3 = vld [vmem:[#allocation8 + $0x170] sm:$0xff]  ;;  %v560_v4 = vld [vmem:[#allocation8 + $0x178] sm:$0xff]  ;;  %s2864_s4 = sld [smem:[#allocation29_spill]]  ;;  %s2275_s21 = smov 64   ;;  %vm643_vm4 = vcmask 1047556  }
  0x4f   : > { %569 = vmatpush.msra.mxu0 %v558_v2  ;;  %589 = vmatpush.msra.mxu1 %v559_v3  ;;  %v555_v5 = vld [vmem:[#allocation8 + $0x150] sm:$0xff]  ;;  %v556_v6 = vld [vmem:[#allocation8 + $0x158] sm:$0xff]  ;;  %v553_v19 = vld [vmem:[#allocation8 + $0x140] sm:$0xff]  ;;  %s452_s11 = scalar_lea.vmem [#allocation12], %s2458_s17  ;;  %s2276_s27 = smov 32   ;;  %vm993_vm5 = vcmask 261120  }
  0x50   : > { %609 = vmatpush.msra.mxu2 %v560_v4  ;;  %v552_v18 = vld [vmem:[#allocation8 + $0x138] sm:$0xff]  ;;  %v554_v20 = vld [vmem:[#allocation8 + $0x148] sm:$0xff]  ;;  %v549_v21 = vld [vmem:[#allocation8 + $0x120] sm:$0xff]  ;;  %s2843_s18 = scalar_lea.vmem [#allocation14], %s2458_s17  ;;  %s2277_s26 = smov 96   ;;  %vm1109_vm7 = vcmask 64512  }
  0x51   : > { %570 = vmatpush.msra.mxu0 %v555_v5  ;;  %590 = vmatpush.msra.mxu1 %v556_v6  ;;  %v550_v22 = vld [vmem:[#allocation8 + $0x128] sm:$0xff]  ;;  %v551_v23 = vld [vmem:[#allocation8 + $0x130] sm:$0xff]  ;;  %v548_v26 = vld [vmem:[#allocation8 + $0x118] sm:$0xff]  ;;  %vm1369_vm8 = vcmask 523264   ;;  %vm1371_vm9 = vcmask 785408   ;;  %s466_s28 = scalar_lea.vmem [#allocation15], %s2458_s17 }
  0x52   : > { %610 = vmatpush.msra.mxu2 %v557_v7  ;;  %v546_v24 = vld [vmem:[#allocation8 + $0x108] sm:$0xff]  ;;  %v547_v25 = vld [vmem:[#allocation8 + $0x110] sm:$0xff]  ;;  %v544_v28 = vld [vmem:[#allocation8 + $0xf8] sm:$0xff]  ;;  %s2718_s29 = sshll.u32 %s2359_s20, 3  ;;  %s2865_s7 = sld [smem:[#allocation31_spill]] }
  0x53   : > { %571 = vmatpush.msra.mxu0 %v552_v18  ;;  %591 = vmatpush.msra.mxu1 %v553_v19  ;;  %v543_v27 = vld [vmem:[#allocation8 + $0xf0] sm:$0xff]  ;;  %v545_v29 = vld [vmem:[#allocation8 + $0x100] sm:$0xff]  ;;  %v540_v30 = vld [vmem:[#allocation8 + $0xd8] sm:$0xff]  ;;  %s1416_s22 = sand.u32 1, %s2359_s20  }
  0x54   : > { %v1901_v8 = vpop.eup %1900  ;;  %611 = vmatpush.msra.mxu2 %v554_v20  ;;  %v541_v31 = vld [vmem:[#allocation8 + $0xe0] sm:$0xff]  ;;  %v542_v32 = vld [vmem:[#allocation8 + $0xe8] sm:$0xff]  ;;  %v539_v35 = vld [vmem:[#allocation8 + $0xd0] sm:$0xff] }
  0x55   : > { %v478_v9 = vmul.f32 128.0, %v1901_v8  ;;  %vm482_vm0 = vweird.f32 %v1901_v8  ;;  %572 = vmatpush.msra.mxu0 %v549_v21  ;;  %592 = vmatpush.msra.mxu1 %v550_v22  ;;  %v537_v33 = vld [vmem:[#allocation8 + $0xc0] sm:$0xff]  ;;  %v538_v34 = vld [vmem:[#allocation8 + $0xc8] sm:$0xff]  ;;  %v535_v37 = vld [vmem:[#allocation8 + $0xb0] sm:$0xff] }
  0x56   : > { %612 = vmatpush.msra.mxu2 %v551_v23  ;;  %v534_v36 = vld [vmem:[#allocation8 + $0xa8] sm:$0xff]  ;;  %v536_v38 = vld [vmem:[#allocation8 + $0xb8] sm:$0xff]  ;;  %v531_v39 = vld [vmem:[#allocation8 + $0x90] sm:$0xff]  ;;  %v2278_v23 = vmov 1983009808  }
  0x57   : > { %v479_v10 = vsub.f32 1.0, %v478_v9  ;;  %573 = vmatpush.msra.mxu0 %v546_v24  ;;  %593 = vmatpush.msra.mxu1 %v547_v25  ;;  %v532_v40 = vld [vmem:[#allocation8 + $0x98] sm:$0xff]  ;;  %v533_v41 = vld [vmem:[#allocation8 + $0xa0] sm:$0xff]  ;;  %v530_v44 = vld [vmem:[#allocation8 + $0x88] sm:$0xff]  ;;  %v648_v24 = vunpack.c.l.s4 %v2278_v23 }
  0x58   : > { %613 = vmatpush.msra.mxu2 %v548_v26  ;;  %v528_v42 = vld [vmem:[#allocation8 + $0x78] sm:$0xff]  ;;  %v529_v43 = vld [vmem:[#allocation8 + $0x80] sm:$0xff]  ;;  %v526_v46 = vld [vmem:[#allocation8 + $0x68] sm:$0xff]  ;;  %s1456_s5 = scalar_lea.hbm %s2865_s7, %s2718_s29  ;;  %s2090_s24 = scalar_lea.hbm %s2865_s7, 16 }
  0x59   : > { %v480_v11 = vmul.f32 %v1901_v8, %v479_v10  ;;  %574 = vmatpush.msra.mxu0 %v543_v27  ;;  %594 = vmatpush.msra.mxu1 %v544_v28  ;;  %v525_v45 = vld [vmem:[#allocation8 + $0x60] sm:$0xff]  ;;  %v527_v47 = vld [vmem:[#allocation8 + $0x70] sm:$0xff]  ;;  %v522_v48 = vld [vmem:[#allocation8 + $0x48] sm:$0xff] }
  0x5a   : > { %614 = vmatpush.msra.mxu2 %v545_v29  ;;  %v523_v49 = vld [vmem:[#allocation8 + $0x50] sm:$0xff]  ;;  %v524_v50 = vld [vmem:[#allocation8 + $0x58] sm:$0xff]  ;;  %v521_v53 = vld [vmem:[#allocation8 + $0x40] sm:$0xff]  ;;  %v2505_v29 = vunpack.c.0.s8 %v648_v24 }
  0x5b   : > { %v481_v12 = vadd.f32 %v1901_v8, %v480_v11  ;;  %575 = vmatpush.msra.mxu0 %v540_v30  ;;  %595 = vmatpush.msra.mxu1 %v541_v31  ;;  %v519_v51 = vld [vmem:[#allocation8 + $0x30] sm:$0xff]  ;;  %v520_v52 = vld [vmem:[#allocation8 + $0x38] sm:$0xff]  ;;  %v517_v55 = vld [vmem:[#allocation8 + $0x20] sm:$0xff] }
  0x5c   : > { %615 = vmatpush.msra.mxu2 %v542_v32  ;;  %v516_v54 = vld [vmem:[#allocation8 + $0x18] sm:$0xff]  ;;  %v518_v56 = vld [vmem:[#allocation8 + $0x28] sm:$0xff]  ;;  %v513_v57 = vld [vmem:[#allocation8] sm:$0xff] }
  0x5d   : > { %v2474_v13 = vsel %vm482_vm0, %v1901_v8, %v481_v12  ;;  %576 = vmatpush.msra.mxu0 %v537_v33  ;;  %596 = vmatpush.msra.mxu1 %v538_v34  ;;  %v514_v58 = vld [vmem:[#allocation8 + $0x8] sm:$0xff]  ;;  %v515_v59 = vld [vmem:[#allocation8 + $0x10] sm:$0xff]  ;;  %v1898_v5 = vld [vmem:[#allocation5] ss:$0 sm:$0xff]  ;;  %v2279_v33 = vmov 1934713408  }
  0x5e   : > { %616 = vmatpush.msra.mxu2 %v539_v35  ;;  %v1899_v8 = vld [vmem:[#allocation7] ss:$0 sm:$0xff]  ;;  %v561_v11 = vld [vmem:[%s2864_s4] sm:$0x7]  ;;  %v672_v34 = vunpack.c.l.s4 %v2279_v33 }
  0x5f   : > { %577 = vmatpush.msra.mxu0 %v534_v36  ;;  %597 = vmatpush.msra.mxu1 %v535_v37  ;;  %v563_v12 = vperm.slane %v561_v11, 0  ;;  %v565_v19 = vperm.slane %v561_v11, 2 }
  0x60   : > { %617 = vmatpush.msra.mxu2 %v536_v38 }
  0x61   : > { %578 = vmatpush.msra.mxu0 %v531_v39  ;;  %598 = vmatpush.msra.mxu1 %v532_v40 }
  0x62   : > { %618 = vmatpush.msra.mxu2 %v533_v41 }
  0x63   : > { %579 = vmatpush.msra.mxu0 %v528_v42  ;;  %599 = vmatpush.msra.mxu1 %v529_v43  ;;  %v2512_v42 = vunpack.c.0.s8 %v672_v34 }
  0x64   : > { %619 = vmatpush.msra.mxu2 %v530_v44 }
  0x65   : > { %580 = vmatpush.msra.mxu0 %v525_v45  ;;  %600 = vmatpush.msra.mxu1 %v526_v46 }
  0x66   : > { %620 = vmatpush.msra.mxu2 %v527_v47 }
  0x67   : > { %581 = vmatpush.msra.mxu0 %v522_v48  ;;  %601 = vmatpush.msra.mxu1 %v523_v49 }
  0x68   : > { %621 = vmatpush.msra.mxu2 %v524_v50 }
  0x69   : > { %582 = vmatpush.msra.mxu0 %v519_v51  ;;  %602 = vmatpush.msra.mxu1 %v520_v52 }
  0x6a   : > { %622 = vmatpush.msra.mxu2 %v521_v53 }
  0x6b   : > { %583 = vmatpush.msra.mxu0 %v516_v54  ;;  %603 = vmatpush.msra.mxu1 %v517_v55 }
  0x6c   : > { %623 = vmatpush.msra.mxu2 %v518_v56 }
  0x6d   : > { %584 = vmatpush.msra.mxu0 %v513_v57  ;;  %604 = vmatpush.msra.mxu1 %v514_v58 }
  0x6e   : > { %624 = vmatpush.msra.mxu2 %v515_v59 }
  0xc1   : > { %v476_v14 = vpop.xlane.xlu0 %475 }
  0xc2   : > { %v484_v15 = vmul.f32 %v2474_v13, %v476_v14 }
  0xc4   : > { %v2477_v16 = vsub.f32 %v474_v0, %v484_v15 }
  0xc6   : > { %v486_v17 = vmul.f32 %v2477_v16, %v2477_v16 }
  0xc8   : > { %487 = vadd.xlane.f32.xlu0 %v486_v17 }
 0x13b   : > { %v488_v60 = vpop.xlane.xlu0 %487 }
 0x13c   : > { %v489_v61 = vmul.f32 %v488_v60, %v2474_v13  ;;  %v564_v13 = vperm.slane %v561_v11, 1 }
 0x13e   : > { %v490_v62 = vadd.f32 1e-05, %v489_v61 }
 0x140   : > { %1902 = vrsqrt.f32 %v490_v62  ;;  %vm497_vm2 = vweird.f32 %v490_v62 }
 0x146   : > { %v1903_v63 = vpop.eup %1902 }
 0x147   : > { %v492_v0 = vmul.f32 %v1903_v63, %v490_v62  ;;  %vm498_vm1 = vweird.f32 %v1903_v63 }
 0x148   : > { %vm499_vm3 = vmor %vm497_vm2, %vm498_vm1 }
 0x149   : > { %v493_v1 = vmul.f32 %v1903_v63, %v492_v0 }
 0x14b   : > { %v494_v2 = vmul.f32 0.5, %v493_v1 }
 0x14d   : > { %v495_v3 = vsub.f32 1.5, %v494_v2 }
 0x14f   : > { %v496_v4 = vmul.f32 %v1903_v63, %v495_v3 }
 0x151   : > { %v500_v6 = vsel %vm499_vm3, %v1903_v63, %v496_v4 }
 0x152   : > { %v501_v7 = vmul.f32 %v500_v6, %v2477_v16 }
 0x154   : > { %v506_v9 = vmul.f32 %v1898_v5, %v501_v7 }
 0x156   : > { %v511_v10 = vadd.f32 %v1899_v8, %v506_v9 }
 0x158   : > { %585 = vmatmul.f32.vlgmr.msra.gmra.mxu0 %v511_v10  ;;  %605 = vmatmul.f32.vlgmr.msra.gmra.mxu1 %v511_v10  ;;  %512 = vst [vmem:[%s2842_s1] sm:$0xff] %v511_v10  ;;  %s2731_s1 = scalar_lea.sflag [#allocation13], %s1416_s22 }
 0x159   : > { %625 = vmatmul.f32.vlgmr.msra.gmra.mxu2 %v511_v10 }
 0x1d5   : > { %v586_v14 = vpop.f32.mrf.mxu0  ;;  %v606_v15 = vpop.f32.mrf.mxu1 }
 0x1d6   : > { %v587_v16 = vadd.f32 %v586_v14, %v563_v12  ;;  %v607_v17 = vadd.f32 %v606_v15, %v564_v13 }
 0x1d8   : > { %v631_v18 = vmul.f32 0.17677669, %v587_v16  ;;  %757 = vrot.lane.b32.xlu1 %v607_v17, %s2275_s21  ;;  %629 = vst [vmem:[%s452_s11] sm:$0xff] %v607_v17  ;;  %v765_v27 = vrot.slane %v607_v17, 4 }
 0x1da   : > { %639 = vrot.lane.b32.xlu0 %v631_v18, %s2276_s27  ;;  %636 = vrot.lane.b32.xlu2 %v631_v18, %s2275_s21  ;;  %v645_v35 = vrot.slane %v631_v18, 4 }
 0x1dc   : > { %v626_v20 = vpop.f32.mrf.mxu2 }
 0x1dd   : > { %v2495_v21 = vadd.f32 %v626_v20, %v565_v19 }
 0x1df   : > { %630 = vst [vmem:[%s2843_s18] sm:$0xff] %v2495_v21 }
 0x1e0   : > { %760 = vrot.lane.b32.xlu1 %v607_v17, %s2276_s27 }
 0x1e2   : > { %754 = vrot.lane.b32.xlu2 %v607_v17, %s2277_s26 }
 0x1e8   : > { %633 = vrot.lane.b32.xlu1 %v631_v18, %s2277_s26 }
 0x234   : > { %v637_v22 = vpop.permute.xlu2 %636 }
 0x235   : > { %v642_v30 = vrot.slane %v637_v22, 4  ;;  %v646_v39 = vsel %vm643_vm4, %v637_v22, %v645_v35 }
 0x236   : > { %v654_v48 = vperm.slane %v646_v39, %v2505_v29 }
 0x237   : > { %v644_v38 = vsel %vm643_vm4, %v642_v30, %v631_v18 }
 0x238   : > { %v650_v47 = vperm.slane %v644_v38, %v2505_v29  ;;  %v681_v63 = vrot.slane %v654_v48, 4 }
 0x23a   : > { %v669_v62 = vrot.slane %v650_v47, 4 }
 0x23c   : > { %v755_v31 = vpop.permute.xlu2 %754 }
 0x23d   : > { %v777_v37 = vrot.slane %v755_v31, 4 }
 0x24a   : > { %v758_v25 = vpop.permute.xlu1 %757 }
 0x24b   : > { %v763_v26 = vrot.slane %v758_v25, 4  ;;  %v766_v28 = vsel %vm643_vm4, %v758_v25, %v765_v27 }
 0x24c   : > { %v774_v36 = vperm.slane %v766_v28, %v2505_v29  ;;  %v640_v54 = vpop.permute.xlu0 %639 }
 0x24d   : > { %v764_v32 = vsel %vm643_vm4, %v763_v26, %v607_v17  ;;  %v655_v0 = vrot.slane %v640_v54, 4 }
 0x24e   : > { %v770_v40 = vperm.slane %v764_v32, %v2505_v29  ;;  %v801_v45 = vrot.slane %v774_v36, 4 }
 0x250   : > { %v789_v50 = vrot.slane %v770_v40, 4 }
 0x252   : > { %v761_v41 = vpop.permute.xlu1 %760 }
 0x253   : > { %v775_v43 = vrot.slane %v761_v41, 4  ;;  %v778_v44 = vsel %vm643_vm4, %v761_v41, %v777_v37 }
 0x254   : > { %v786_v46 = vperm.slane %v778_v44, %v2505_v29 }
 0x255   : > { %v776_v49 = vsel %vm643_vm4, %v775_v43, %v755_v31 }
 0x256   : > { %v782_v51 = vperm.slane %v776_v49, %v2505_v29  ;;  %v799_v52 = vrot.slane %v786_v46, 4  ;;  %v802_v53 = vsel %vm643_vm4, %v786_v46, %v801_v45 }
 0x257   : > { %v810_v55 = vperm.slane %v802_v53, %v2512_v42 }
 0x258   : > { %v787_v56 = vrot.slane %v782_v51, 4  ;;  %v790_v57 = vsel %vm643_vm4, %v782_v51, %v789_v50  ;;  %v800_v58 = vsel %vm643_vm4, %v799_v52, %v774_v36 }
 0x259   : > { %v798_v59 = vperm.slane %v790_v57, %v2512_v42  ;;  %v806_v60 = vperm.slane %v800_v58, %v2512_v42  ;;  %v817_v61 = vrot.slane %v810_v55, 4 }
 0x25a   : > { %v788_v1 = vsel %vm643_vm4, %v787_v56, %v770_v40  ;;  %v634_v2 = vpop.permute.xlu1 %633 }
 0x25b   : > { %v794_v3 = vperm.slane %v788_v1, %v2512_v42  ;;  %v813_v4 = vrot.slane %v798_v59, 4  ;;  %v815_v5 = vrot.slane %v806_v60, 4  ;;  %v818_v6 = vsel %vm643_vm4, 0.0, %v817_v61 }
 0x25c   : > { %v830_v7 = vsel %vm643_vm4, %v817_v61, %v806_v60  ;;  %v835_v8 = vrot.slane %v818_v6, 4  ;;  %v656_v9 = vsel %vm643_vm4, %v655_v0, %v634_v2  ;;  %v657_v10 = vrot.slane %v634_v2, 4 }
 0x25d   : > { %v811_v11 = vrot.slane %v794_v3, 4  ;;  %v814_v12 = vsel %vm643_vm4, 0.0, %v813_v4  ;;  %v816_v13 = vsel %vm643_vm4, 0.0, %v815_v5  ;;  %v834_v14 = vperm.slane %v830_v7, %v2505_v29 }
 0x25e   : > { %v824_v15 = vrot.slane %v814_v12, 4  ;;  %v658_v16 = vsel %vm643_vm4, %v640_v54, %v657_v10  ;;  %v662_v17 = vperm.slane %v656_v9, %v2505_v29  ;;  %v819_v18 = vsel %vm643_vm4, %v813_v4, %v794_v3 }
 0x25f   : > { %v666_v19 = vperm.slane %v658_v16, %v2505_v29  ;;  %v812_v20 = vsel %vm643_vm4, 0.0, %v811_v11  ;;  %v823_v22 = vperm.slane %v819_v18, %v2505_v29  ;;  %v836_v23 = vsel %vm643_vm4, %v835_v8, %v816_v13 }
 0x260   : > { %v667_v24 = vrot.slane %v662_v17, 4  ;;  %v670_v25 = vsel %vm643_vm4, %v662_v17, %v669_v62  ;;  %v825_v26 = vsel %vm643_vm4, %v824_v15, %v812_v20  ;;  %v840_v27 = vperm.slane %v836_v23, %v2505_v29 }
 0x261   : > { %v678_v28 = vperm.slane %v670_v25, %v2512_v42  ;;  %v679_v30 = vrot.slane %v666_v19, 4  ;;  %v682_v31 = vsel %vm643_vm4, %v666_v19, %v681_v63  ;;  %v829_v32 = vperm.slane %v825_v26, %v2505_v29 }
 0x262   : > { %v668_v33 = vsel %vm643_vm4, %v667_v24, %v650_v47  ;;  %v690_v34 = vperm.slane %v682_v31, %v2512_v42  ;;  %v843_v35 = vrot.slane %v823_v22, 4  ;;  %v855_v36 = vrot.slane %v834_v14, 4 }
 0x263   : > { %v674_v37 = vperm.slane %v668_v33, %v2512_v42  ;;  %v680_v38 = vsel %vm643_vm4, %v679_v30, %v654_v48  ;;  %v693_v39 = vrot.slane %v678_v28, 4  ;;  %v841_v40 = vrot.slane %v829_v32, 4 }
 0x264   : > { %v686_v41 = vperm.slane %v680_v38, %v2512_v42  ;;  %v697_v43 = vrot.slane %v690_v34, 4  ;;  %v844_v44 = vsel %vm643_vm4, %v829_v32, %v843_v35  ;;  %v856_v45 = vsel %vm643_vm4, %v840_v27, %v855_v36 }
 0x265   : > { %v691_v46 = vrot.slane %v674_v37, 4  ;;  %v694_v47 = vsel %vm643_vm4, 0.0, %v693_v39  ;;  %v699_v49 = vsel %vm643_vm4, %v693_v39, %v674_v37  ;;  %v852_v50 = vperm.slane %v844_v44, %v2512_v42 }
 0x266   : > { %v695_v51 = vrot.slane %v686_v41, 4  ;;  %v698_v52 = vsel %vm643_vm4, 0.0, %v697_v43  ;;  %v703_v48 = vperm.slane %v699_v49, %v2505_v29  ;;  %v704_v53 = vrot.slane %v694_v47, 4 }
 0x267   : > { %v692_v54 = vsel %vm643_vm4, 0.0, %v691_v46  ;;  %v715_v55 = vrot.slane %v698_v52, 4  ;;  %v864_v56 = vperm.slane %v856_v45, %v2512_v42  ;;  %v842_v57 = vsel %vm643_vm4, %v841_v40, %v823_v22 }
 0x268   : > { %v848_v58 = vperm.slane %v842_v57, %v2512_v42  ;;  %v853_v59 = vrot.slane %v840_v27, 4  ;;  %v871_v60 = vrot.slane %v852_v50, 4  ;;  %v696_v61 = vsel %vm643_vm4, 0.0, %v695_v51 }
 0x269   : > { %v869_v62 = vrot.slane %v864_v56, 4  ;;  %v705_v63 = vsel %vm643_vm4, %v704_v53, %v692_v54  ;;  %v710_v0 = vsel %vm643_vm4, %v697_v43, %v686_v41  ;;  %v716_v1 = vsel %vm643_vm4, %v715_v55, %v696_v61 }
 0x26a   : > { %v854_v2 = vsel %vm643_vm4, %v853_v59, %v834_v14  ;;  %v872_v3 = vsel %vm643_vm4, %v864_v56, %v871_v60  ;;  %v867_v4 = vrot.slane %v848_v58, 4  ;;  %v709_v5 = vperm.slane %v705_v63, %v2505_v29 }
 0x26b   : > { %v870_v6 = vsel %vm643_vm4, %v869_v62, %v852_v50  ;;  %v860_v7 = vperm.slane %v854_v2, %v2512_v42  ;;  %1763 = vmatpush.xpose.msk.msra.mxu3 %vm993_vm5, %v872_v3  ;;  %v714_v8 = vperm.slane %v710_v0, %v2505_v29  ;;  %v720_v9 = vperm.slane %v716_v1, %v2505_v29 }
 0x26c   : > { %1761 = vmatpush.xpose.msk.msrb.mxu2 %vm993_vm5, %v870_v6  ;;  %v723_v10 = vrot.slane %v703_v48, 4  ;;  %v721_v11 = vrot.slane %v709_v5, 4  ;;  %v1098_v35 = vlaneseq }
 0x26d   : > { %v865_v12 = vrot.slane %v860_v7, 4  ;;  %v868_v13 = vsel %vm643_vm4, %v860_v7, %v867_v4  ;;  %v735_v14 = vrot.slane %v714_v8, 4  ;;  %v733_v15 = vrot.slane %v720_v9, 4 }
 0x26e   : > { %1759 = vmatpush.xpose.msk.msrb.mxu1 %vm993_vm5, %v868_v13  ;;  %v724_v16 = vsel %vm643_vm4, %v709_v5, %v723_v10  ;;  %v722_v17 = vsel %vm643_vm4, %v721_v11, %v703_v48  ;;  %v1099_v36 = vshrl.u32 %v1098_v35, 7  ;;  %v1101_v37 = vand.u32 127, %v1098_v35 }
 0x26f   : > { %v866_v18 = vsel %vm643_vm4, %v865_v12, %v848_v58  ;;  %v732_v19 = vperm.slane %v724_v16, %v2512_v42  ;;  %v736_v20 = vsel %vm643_vm4, %v720_v9, %v735_v14  ;;  %v728_v22 = vperm.slane %v722_v17, %v2512_v42 }
 0x270   : > { %1757 = vmatpush.xpose.msk.msrb.mxu0 %vm993_vm5, %v866_v18  ;;  %v744_v23 = vperm.slane %v736_v20, %v2512_v42  ;;  %v734_v24 = vsel %vm643_vm4, %v733_v15, %v714_v8  ;;  %vm1102_vm6 = vcmp.le.s32.totalorder %v1101_v37, %v1099_v36  ;;  %v885_v14 = vrot.slane %v2495_v21, 4 }
 0x271   : > { %v751_v25 = vrot.slane %v732_v19, 4  ;;  %v740_v26 = vperm.slane %v734_v24, %v2512_v42  ;;  %v747_v27 = vrot.slane %v728_v22, 4 }
 0x272   : > { %v749_v28 = vrot.slane %v744_v23, 4 }
 0x273   : > { %v752_v30 = vsel %vm643_vm4, %v744_v23, %v751_v25  ;;  %v748_v31 = vsel %vm643_vm4, %v740_v26, %v747_v27  ;;  %v745_v32 = vrot.slane %v740_v26, 4 }
 0x274   : > { %1764 = vmatmul.msk.f32.vlgmr.msra.gmra.mxu3 %vm993_vm5, %v752_v30  ;;  %1760 = vmatmul.msk.f32.vlgmr.msrb.gmra.mxu1 %vm993_vm5, %v748_v31  ;;  %v750_v33 = vsel %vm643_vm4, %v749_v28, %v732_v19 }
 0x275   : > { %1762 = vmatmul.msk.f32.vlgmr.msrb.gmra.mxu2 %vm993_vm5, %v750_v33  ;;  %v746_v34 = vsel %vm643_vm4, %v745_v32, %v728_v22 }
 0x276   : > { %1758 = vmatmul.msk.f32.vlgmr.msrb.gmra.mxu0 %vm993_vm5, %v746_v34 }
 0x2f1   : > { %v1043_v41 = vpop.f32.mrf.mxu1 }
 0x2f2   : > { %v1106_v49 = vsel %vm1102_vm6, %v1043_v41, -1e+09 }
 0x2f3   : > { %v1017_v38 = vpop.f32.mrf.mxu0  ;;  %v1113_v51 = vsel %vm1109_vm7, %v1106_v49, -inf }
 0x2f4   : > { %v1105_v39 = vsel %vm1102_vm6, %v1017_v38, -1e+09 }
 0x2f5   : > { %v1110_v40 = vsel %vm1109_vm7, %v1105_v39, -inf }
 0x2f6   : > { %1111 = vmax.xlane.f32.xlu2 %v1110_v40 }
 0x2f7   : > { %v1095_v43 = vpop.f32.mrf.mxu3 }
 0x2f8   : > { %v1108_v44 = vsel %vm1102_vm6, %v1095_v43, -1e+09  ;;  %v1069_v45 = vpop.f32.mrf.mxu2 }
 0x2f9   : > { %v1107_v46 = vsel %vm1102_vm6, %v1069_v45, -1e+09  ;;  %v1119_v47 = vsel %vm1109_vm7, %v1108_v44, -inf }
 0x2fa   : > { %1120 = vmax.xlane.f32.xlu1 %v1119_v47  ;;  %v1116_v50 = vsel %vm1109_vm7, %v1107_v46, -inf }
 0x2fb   : > { %1117 = vmax.xlane.f32.xlu0 %v1116_v50 }
 0x2fe   : > { %1114 = vmax.xlane.f32.xlu2 %v1113_v51 }
 0x30f   : > { %880 = vrot.lane.b32.xlu0 %v2495_v21, %s2276_s27 }
 0x313   : > { %877 = vrot.lane.b32.xlu1 %v2495_v21, %s2275_s21 }
 0x316   : > { %874 = vrot.lane.b32.xlu2 %v2495_v21, %s2277_s26 }
 0x369   : > { %v1112_v52 = vpop.xlane.xlu2 %1111 }
 0x36a   : > { %v1122_v48 = vsub.f32 %v1105_v39, %v1112_v52 }
 0x36c   : > { %v1126_v53 = vmul.f32 1.442695, %v1122_v48 }
 0x36d   : > { %v1121_v54 = vpop.xlane.xlu1 %1120 }
 0x36e   : > { %1904 = vpow2.f32 %v1126_v53  ;;  %v1125_v55 = vsub.f32 %v1108_v44, %v1121_v54  ;;  %v1118_v56 = vpop.xlane.xlu0 %1117 }
 0x36f   : > { %v1124_v57 = vsub.f32 %v1107_v46, %v1118_v56 }
 0x370   : > { %v1132_v58 = vmul.f32 1.442695, %v1125_v55 }
 0x371   : > { %v1130_v59 = vmul.f32 1.442695, %v1124_v57  ;;  %v1115_v60 = vpop.xlane.xlu2 %1114 }
 0x372   : > { %1906 = vpow2.f32 %v1132_v58  ;;  %v1123_v61 = vsub.f32 %v1106_v49, %v1115_v60 }
 0x373   : > { %1908 = vpow2.f32 %v1130_v59 }
 0x374   : > { %v2606_v62 = vpop.eup %1904  ;;  %v1128_v63 = vmul.f32 1.442695, %v1123_v61 }
 0x375   : > { %v1134_v0 = vsel %vm1109_vm7, %v2606_v62, 0.0 }
 0x376   : > { %1910 = vpow2.f32 %v1128_v63  ;;  %1135 = vadd.xlane.f32.xlu2 %v1134_v0 }
 0x378   : > { %v2610_v1 = vpop.eup %1906 }
 0x379   : > { %v2612_v2 = vpop.eup %1908  ;;  %v1143_v3 = vsel %vm1109_vm7, %v2610_v1, 0.0  ;;  %v875_v6 = vpop.permute.xlu2 %874 }
 0x37a   : > { %1144 = vadd.xlane.f32.xlu1 %v1143_v3  ;;  %v1140_v4 = vsel %vm1109_vm7, %v2612_v2, 0.0  ;;  %v897_v8 = vrot.slane %v875_v6, 4 }
 0x37b   : > { %1141 = vadd.xlane.f32.xlu0 %v1140_v4 }
 0x37c   : > { %v2618_v5 = vpop.eup %1910 }
 0x37d   : > { %v1137_v7 = vsel %vm1109_vm7, %v2618_v5, 0.0 }
 0x37e   : > { %1138 = vadd.xlane.f32.xlu2 %v1137_v7 }
 0x381   : > { %v881_v9 = vpop.permute.xlu0 %880 }
 0x382   : > { %v895_v10 = vrot.slane %v881_v9, 4  ;;  %v898_v11 = vsel %vm643_vm4, %v881_v9, %v897_v8 }
 0x383   : > { %v906_v12 = vperm.slane %v898_v11, %v2505_v29 }
 0x384   : > { %v896_v13 = vsel %vm643_vm4, %v895_v10, %v875_v6 }
 0x385   : > { %v902_v15 = vperm.slane %v896_v13, %v2505_v29  ;;  %v919_v16 = vrot.slane %v906_v12, 4  ;;  %v878_v17 = vpop.permute.xlu1 %877 }
 0x386   : > { %v883_v18 = vrot.slane %v878_v17, 4  ;;  %v886_v19 = vsel %vm643_vm4, %v878_v17, %v885_v14 }
 0x387   : > { %v907_v20 = vrot.slane %v902_v15, 4  ;;  %v894_v22 = vperm.slane %v886_v19, %v2505_v29 }
 0x388   : > { %v884_v23 = vsel %vm643_vm4, %v883_v18, %v2495_v21 }
 0x389   : > { %v890_v24 = vperm.slane %v884_v23, %v2505_v29  ;;  %v920_v25 = vsel %vm643_vm4, %v919_v16, %v894_v22  ;;  %v921_v26 = vrot.slane %v894_v22, 4 }
 0x38a   : > { %v926_v27 = vperm.slane %v920_v25, %v2512_v42 }
 0x38b   : > { %v908_v28 = vsel %vm643_vm4, %v907_v20, %v890_v24  ;;  %v909_v30 = vrot.slane %v890_v24, 4  ;;  %v922_v31 = vsel %vm643_vm4, %v906_v12, %v921_v26 }
 0x38c   : > { %v914_v32 = vperm.slane %v908_v28, %v2512_v42  ;;  %v930_v33 = vperm.slane %v922_v31, %v2512_v42  ;;  %v935_v35 = vrot.slane %v926_v27, 4 }
 0x38d   : > { %v910_v34 = vsel %vm643_vm4, %v902_v15, %v909_v30 }
 0x38e   : > { %v918_v21 = vperm.slane %v910_v34, %v2512_v42  ;;  %v937_v36 = vrot.slane %v930_v33, 4  ;;  %v931_v37 = vrot.slane %v914_v32, 4  ;;  %v936_v45 = vsel %vm643_vm4, 0.0, %v935_v35 }
 0x390   : > { %v933_v38 = vrot.slane %v918_v21, 4  ;;  %v938_v39 = vsel %vm643_vm4, 0.0, %v937_v36  ;;  %v950_v40 = vsel %vm643_vm4, %v937_v36, %v926_v27  ;;  %v932_v52 = vsel %vm643_vm4, 0.0, %v931_v37  ;;  %v1389_v27 = vld [vmem:[#allocation10 + $0x78] sm:$0xff] }
 0x391   : > { %v954_v41 = vperm.slane %v950_v40, %v2505_v29  ;;  %v955_v43 = vrot.slane %v938_v39, 4 }
 0x392   : > { %v934_v44 = vsel %vm643_vm4, 0.0, %v933_v38  ;;  %v939_v46 = vsel %vm643_vm4, %v933_v38, %v914_v32 }
 0x393   : > { %v944_v47 = vrot.slane %v934_v44, 4  ;;  %v956_v49 = vsel %vm643_vm4, %v955_v43, %v936_v45  ;;  %v943_v50 = vperm.slane %v939_v46, %v2505_v29  ;;  %v975_v51 = vrot.slane %v954_v41, 4 }
 0x394   : > { %v960_v48 = vperm.slane %v956_v49, %v2505_v29 }
 0x395   : > { %v945_v53 = vsel %vm643_vm4, %v944_v47, %v932_v52  ;;  %v963_v54 = vrot.slane %v943_v50, 4 }
 0x396   : > { %v949_v55 = vperm.slane %v945_v53, %v2505_v29  ;;  %v976_v56 = vsel %vm643_vm4, %v960_v48, %v975_v51  ;;  %v973_v57 = vrot.slane %v960_v48, 4 }
 0x397   : > { %v984_v58 = vperm.slane %v976_v56, %v2512_v42 }
 0x398   : > { %v964_v59 = vsel %vm643_vm4, %v949_v55, %v963_v54  ;;  %v961_v60 = vrot.slane %v949_v55, 4  ;;  %v974_v61 = vsel %vm643_vm4, %v973_v57, %v954_v41 }
 0x399   : > { %v972_v63 = vperm.slane %v964_v59, %v2512_v42  ;;  %v989_v0 = vrot.slane %v984_v58, 4  ;;  %v980_v3 = vperm.slane %v974_v61, %v2512_v42 }
 0x39a   : > { %v962_v4 = vsel %vm643_vm4, %v961_v60, %v943_v50 }
 0x39b   : > { %v990_v6 = vsel %vm643_vm4, %v989_v0, %v972_v63  ;;  %v968_v7 = vperm.slane %v962_v4, %v2512_v42  ;;  %v985_v8 = vrot.slane %v980_v3, 4  ;;  %v991_v9 = vrot.slane %v972_v63, 4 }
 0x39c   : > { %1218 = vmatpush.msra.mxu1 %v990_v6 }
 0x39d   : > { %v986_v10 = vsel %vm643_vm4, %v985_v8, %v968_v7  ;;  %v987_v11 = vrot.slane %v968_v7, 4  ;;  %v992_v12 = vsel %vm643_vm4, %v984_v58, %v991_v9 }
 0x39e   : > { %1172 = vmatpush.msrb.mxu3 %v986_v10  ;;  %1241 = vmatpush.msra.mxu2 %v992_v12 }
 0x39f   : > { %v988_v13 = vsel %vm643_vm4, %v980_v3, %v987_v11 }
 0x3a0   : > { %1195 = vmatpush.msra.mxu0 %v988_v13  ;;  %1390 = vmatpush.msra.mxu3 %v1389_v27 }
 0x3e9   : > { %v1136_v14 = vpop.xlane.xlu2 %1135 }
 0x3ea   : > { %1912 = vrcp.f32 %v1136_v14 }
 0x3ed   : > { %v1145_v15 = vpop.xlane.xlu1 %1144 }
 0x3ee   : > { %1914 = vrcp.f32 %v1145_v15  ;;  %v1142_v16 = vpop.xlane.xlu0 %1141 }
 0x3ef   : > { %1916 = vrcp.f32 %v1142_v16 }
 0x3f0   : > { %v1913_v17 = vpop.eup %1912 }
 0x3f1   : > { %v1139_v18 = vpop.xlane.xlu2 %1138  ;;  %v1150_v19 = vmul.f32 %v1913_v17, %v2606_v62 }
 0x3f2   : > { %1918 = vrcp.f32 %v1139_v18 }
 0x3f3   : > { %1765 = vmatmul.msk.f32.vlgmr.msrb.gmra.mxu3 %vm1109_vm7, %v1150_v19 }
 0x3f4   : > { %v1915_v20 = vpop.eup %1914 }
 0x3f5   : > { %v1917_v22 = vpop.eup %1916  ;;  %v1153_v23 = vmul.f32 %v1915_v20, %v2610_v1 }
 0x3f6   : > { %v1152_v24 = vmul.f32 %v1917_v22, %v2612_v2 }
 0x3f7   : > { %1768 = vmatmul.msk.f32.vlgmr.msra.gmra.mxu2 %vm1109_vm7, %v1153_v23 }
 0x3f8   : > { %v1919_v25 = vpop.eup %1918  ;;  %1767 = vmatmul.msk.f32.vlgmr.msra.gmra.mxu1 %vm1109_vm7, %v1152_v24 }
 0x3f9   : > { %v1151_v26 = vmul.f32 %v1919_v25, %v2618_v5 }
 0x3fb   : > { %1766 = vmatmul.msk.f32.vlgmr.msra.gmra.mxu0 %vm1109_vm7, %v1151_v26 }
 0x475   : > { %v1220_v62 = vpop.f32.mrf.mxu1 }
 0x476   : > { %v1246_v28 = vrot.slane %v1220_v62, 4  ;;  %v1174_v30 = vpop.f32.mrf.mxu3 }
 0x477   : > { %v1248_v31 = vrot.slane %v1174_v30, 4 }
 0x478   : > { %v1247_v32 = vsel %vm643_vm4, %v1246_v28, %v1174_v30  ;;  %v1197_v1 = vpop.f32.mrf.mxu0 }
 0x479   : > { %v1249_v2 = vsel %vm643_vm4, %v1220_v62, %v1248_v31  ;;  %v1260_v33 = vrot.slane %v1197_v1, 4  ;;  %v1253_v34 = vperm.slane %v1247_v32, %v2505_v29  ;;  %v1388_v31 = vld [vmem:[#allocation10 + $0x70] sm:$0xff]  ;;  %v1387_v32 = vld [vmem:[#allocation10 + $0x68] sm:$0xff] }
 0x47a   : > { %v1257_v21 = vperm.slane %v1249_v2, %v2505_v29  ;;  %v1243_v35 = vpop.f32.mrf.mxu2  ;;  %1391 = vmatpush.msra.mxu3 %v1388_v31  ;;  %v1384_v2 = vld [vmem:[#allocation10 + $0x50] sm:$0xff] }
 0x47b   : > { %v1258_v5 = vrot.slane %v1243_v35, 4  ;;  %v1261_v36 = vsel %vm643_vm4, %v1243_v35, %v1260_v33  ;;  %v1272_v40 = vrot.slane %v1253_v34, 4  ;;  %v1383_v33 = vld [vmem:[#allocation10 + $0x48] sm:$0xff]  ;;  %v1380_v35 = vld [vmem:[#allocation10 + $0x30] sm:$0xff] }
 0x47c   : > { %v1284_v37 = vrot.slane %v1257_v21, 4  ;;  %v1269_v38 = vperm.slane %v1261_v36, %v2505_v29  ;;  %1392 = vmatpush.msra.mxu3 %v1387_v32  ;;  %v1378_v36 = vld [vmem:[#allocation10 + $0x20] sm:$0xff] }
 0x47d   : > { %v1259_v39 = vsel %vm643_vm4, %v1258_v5, %v1197_v1  ;;  %v1385_v1 = vld [vmem:[#allocation10 + $0x58] sm:$0xff]  ;;  %v1379_v5 = vld [vmem:[#allocation10 + $0x28] sm:$0xff] }
 0x47e   : > { %v1265_v41 = vperm.slane %v1259_v39, %v2505_v29  ;;  %v1282_v43 = vrot.slane %v1269_v38, 4  ;;  %v1285_v44 = vsel %vm643_vm4, %v1269_v38, %v1284_v37  ;;  %v1377_v37 = vld [vmem:[#allocation10 + $0x18] sm:$0xff]  ;;  %v1376_v38 = vld [vmem:[#allocation10 + $0x10] sm:$0xff]  ;;  %v1375_v39 = vld [vmem:[#allocation10 + $0x8] sm:$0xff] }
 0x47f   : > { %v1293_v45 = vperm.slane %v1285_v44, %v2512_v42 }
 0x480   : > { %v1270_v46 = vrot.slane %v1265_v41, 4  ;;  %v1273_v47 = vsel %vm643_vm4, %v1265_v41, %v1272_v40  ;;  %v1283_v49 = vsel %vm643_vm4, %v1282_v43, %v1257_v21  ;;  %v1381_v21 = vld [vmem:[#allocation10 + $0x38] sm:$0xff]  ;;  %v1374_v40 = vld [vmem:[#allocation10] sm:$0xff] }
 0x481   : > { %v1281_v50 = vperm.slane %v1273_v47, %v2512_v42  ;;  %v1289_v51 = vperm.slane %v1283_v49, %v2512_v42  ;;  %v1300_v52 = vrot.slane %v1293_v45, 4 }
 0x482   : > { %v1271_v48 = vsel %vm643_vm4, %v1270_v46, %v1253_v34  ;;  %v1382_v34 = vld [vmem:[#allocation10 + $0x40] sm:$0xff] }
 0x483   : > { %v1277_v53 = vperm.slane %v1271_v48, %v2512_v42  ;;  %v1296_v54 = vrot.slane %v1281_v50, 4  ;;  %v1298_v55 = vrot.slane %v1289_v51, 4  ;;  %v1301_v56 = vsel %vm643_vm4, 0.0, %v1300_v52 }
 0x484   : > { %v1313_v57 = vsel %vm643_vm4, %v1300_v52, %v1289_v51  ;;  %v1318_v58 = vrot.slane %v1301_v56, 4 }
 0x485   : > { %v1294_v59 = vrot.slane %v1277_v53, 4  ;;  %v1297_v60 = vsel %vm643_vm4, 0.0, %v1296_v54  ;;  %v1299_v61 = vsel %vm643_vm4, 0.0, %v1298_v55  ;;  %v1302_v63 = vsel %vm643_vm4, %v1296_v54, %v1277_v53 }
 0x486   : > { %v1307_v0 = vrot.slane %v1297_v60, 4  ;;  %v1306_v3 = vperm.slane %v1302_v63, %v2505_v29  ;;  %v1317_v4 = vperm.slane %v1313_v57, %v2505_v29  ;;  %v1319_v6 = vsel %vm643_vm4, %v1318_v58, %v1299_v61 }
 0x487   : > { %v1295_v7 = vsel %vm643_vm4, 0.0, %v1294_v59  ;;  %v1323_v8 = vperm.slane %v1319_v6, %v2505_v29 }
 0x488   : > { %v1308_v9 = vsel %vm643_vm4, %v1307_v0, %v1295_v7  ;;  %v1326_v10 = vrot.slane %v1306_v3, 4  ;;  %v1338_v11 = vrot.slane %v1317_v4, 4 }
 0x489   : > { %v1312_v12 = vperm.slane %v1308_v9, %v2505_v29  ;;  %v1336_v13 = vrot.slane %v1323_v8, 4 }
 0x48a   : > { %v1339_v14 = vsel %vm643_vm4, %v1323_v8, %v1338_v11 }
 0x48b   : > { %v1327_v15 = vsel %vm643_vm4, %v1312_v12, %v1326_v10  ;;  %v1347_v16 = vperm.slane %v1339_v14, %v2512_v42  ;;  %v1324_v17 = vrot.slane %v1312_v12, 4  ;;  %v1337_v18 = vsel %vm643_vm4, %v1336_v13, %v1317_v4 }
 0x48c   : > { %v1335_v19 = vperm.slane %v1327_v15, %v2512_v42  ;;  %v1343_v20 = vperm.slane %v1337_v18, %v2512_v42 }
 0x48d   : > { %v1352_v22 = vrot.slane %v1347_v16, 4  ;;  %v1325_v23 = vsel %vm643_vm4, %v1324_v17, %v1306_v3 }
 0x48e   : > { %v1354_v24 = vrot.slane %v1335_v19, 4  ;;  %v1331_v29 = vperm.slane %v1325_v23, %v2512_v42  ;;  %v1348_v25 = vrot.slane %v1343_v20, 4  ;;  %v1386_v42 = vld [vmem:[#allocation10 + $0x60] sm:$0xff] }
 0x48f   : > { %v1353_v26 = vsel %vm643_vm4, %v1352_v22, %v1335_v19  ;;  %1393 = vmatpush.msra.mxu3 %v1386_v42 }
 0x490   : > { %v1355_v27 = vsel %vm643_vm4, %v1347_v16, %v1354_v24  ;;  %1361 = vrot.lane.b32.xlu2 %v1353_v26, %s2275_s21  ;;  %v1350_v62 = vrot.slane %v1331_v29, 4  ;;  %v1349_v28 = vsel %vm643_vm4, %v1348_v25, %v1331_v29  ;;  %s1484_s21 = scalar_lea.hbm %s2839_s9, %s2718_s29 }
 0x491   : > { %1365 = vrot.lane.b32.xlu0 %v1355_v27, %s2277_s26  ;;  %1394 = vmatpush.msra.mxu3 %v1385_v1  ;;  %s1460_s26 = sshll.u32 %s1456_s5, 4  ;;  %s1461_s26 = int_to_ptr.hbm [resolvable:$true] %s1460_s26 }
 0x492   : > { %v1351_v30 = vsel %vm643_vm4, %v1343_v20, %v1350_v62  ;;  %s2084_s18 = sshra.s32 %s1461_s26, 4  ;;  %s2085_s18 = int_to_ptr.hbm [resolvable:$true] %s2084_s18 }
 0x493   : > { %1357 = vrot.lane.b32.xlu1 %v1351_v30, %s2276_s27  ;;  %1395 = vmatpush.msra.mxu3 %v1384_v2  ;;  %s1458_s27 = sshll.u32 %s452_s11, 4  ;;  %s2086_s0 = scalar_lea.hbm %s2085_s18, 8  ;;  %s1459_s27 = int_to_ptr.vmem [resolvable:$true] %s1458_s27 }
 0x494   : > { %p2087_p1 = scmp.ne.s32.totalorder %s2085_s18, %s2086_s0  ;;  %p2091_p12 = scmp.lt.s32.totalorder %s2085_s18, %s2865_s7 }
 0x495   : > { %1396 = vmatpush.msra.mxu3 %v1383_v33  ;;  %p2092_p7 = scmp.lt.s32.totalorder %s2090_s24, %s2086_s0 }
 0x496   : > { %p2088_p3 = pnand %p2087_p1, %p2424_p5 }
 0x497   : > { %1397 = vmatpush.msra.mxu3 %v1382_v34  ;;  %p2093_p8 = por %p2092_p7, %p2091_p12 }
 0x498   : > { %p2089_p4 = pneg %p2088_p3 }
 0x499   : > { %1398 = vmatpush.msra.mxu3 %v1381_v21 }
 0x49a   : > { %p2094_p9 = pnand %p2093_p8, %p2089_p4 }
 0x49b   : > { %1399 = vmatpush.msra.mxu3 %v1380_v35 }
 0x49d   : > { %1400 = vmatpush.msra.mxu3 %v1379_v5 }
 0x49f   : > { %1401 = vmatpush.msra.mxu3 %v1378_v36 }
 0x4a1   : > { %1402 = vmatpush.msra.mxu3 %v1377_v37 }
 0x4a3   : > { %1403 = vmatpush.msra.mxu3 %v1376_v38 }
 0x4a5   : > { %1404 = vmatpush.msra.mxu3 %v1375_v39 }
 0x4a7   : > { %1405 = vmatpush.msra.mxu3 %v1374_v40 }
 0x4ea   : > { %v1362_v43 = vpop.permute.xlu2 %1361 }
 0x503   : > { %v1366_v45 = vpop.permute.xlu0 %1365 }
 0x505   : > { %v1358_v41 = vpop.permute.xlu1 %1357 }
 0x506   : > { %v1368_v44 = vsel %vm993_vm5, %v1349_v28, %v1358_v41 }
 0x507   : > { %v1370_v46 = vsel %vm1369_vm8, %v1368_v44, %v1362_v43 }
 0x508   : > { %v1372_v47 = vsel %vm1371_vm9, %v1370_v46, %v1366_v45 }
 0x509   : > { %1406 = vmatmul.f32.vlgmr.msra.gmra.mxu3 %v1372_v47  ;;  %1373 = vst [vmem:[%s466_s28] sm:$0xff] %v1372_v47 }
 0x50a   : > { %2097 = shalt.err (!%p2094_p9)
}
 0x50b   : > { %1800 = dma.vmem_to_hbm [thread:$0]  (%p2424_p5), %s1459_s27, 128, %s1461_s26, %s2731_s1  }
 0x50c   : > { %s1486_s11 = sshll.u32 %s466_s28, 4  ;;  %s1488_s5 = sshll.u32 %s1484_s21, 4  ;;  %s1487_s11 = int_to_ptr.vmem [resolvable:$true] %s1486_s11  ;;  %s1489_s5 = int_to_ptr.hbm [resolvable:$true] %s1488_s5 }
 0x50d   : > { %s2744_s4 = scalar_lea.sflag [#allocation16], %s1416_s22  ;;  %s2112_s30 = sshra.s32 %s1489_s5, 4  ;;  %s2113_s30 = int_to_ptr.hbm [resolvable:$true] %s2112_s30 }
 0x50e   : > { %s2114_s20 = scalar_lea.hbm %s2113_s30, 8  ;;  %s2118_s24 = scalar_lea.hbm %s2839_s9, 16 }
 0x50f   : > { %p2115_p10 = scmp.ne.s32.totalorder %s2113_s30, %s2114_s20  ;;  %p2119_p0 = scmp.lt.s32.totalorder %s2113_s30, %s2839_s9 }
 0x510   : > { %p2120_p2 = scmp.lt.s32.totalorder %s2118_s24, %s2114_s20 }
 0x511   : > { %p2116_p13 = pnand %p2115_p10, %p2424_p5 }
 0x512   : > { %p2121_p1 = por %p2120_p2, %p2119_p0 }
 0x513   : > { %p2117_p11 = pneg %p2116_p13 }
 0x515   : > { %p2122_p3 = pnand %p2121_p1, %p2117_p11 }
 0x517   : > { %2125 = shalt.err (!%p2122_p3)
}
 0x518   : > { %1802 = dma.vmem_to_hbm [thread:$0]  (%p2424_p5), %s1487_s11, 128, %s1489_s5, %s2744_s4  }
 0x519   : > { %s1470_s21 = scalar_lea.hbm %s2838_s8, %s2718_s29  ;;  %s2866_s27 = scalar_lea.vmem [#allocation14], %s2458_s17 }
 0x51a   : > { %s1472_s26 = sshll.u32 %s2866_s27, 4  ;;  %s1474_s30 = sshll.u32 %s1470_s21, 4  ;;  %s1473_s26 = int_to_ptr.vmem [resolvable:$true] %s1472_s26  ;;  %s1475_s30 = int_to_ptr.hbm [resolvable:$true] %s1474_s30 }
 0x51b   : > { %s1498_s18 = scalar_lea.hbm %s2840_s10, %s2718_s29  ;;  %s2867_s24 = scalar_lea.vmem [#allocation17], %s2458_s17 }
 0x51c   : > { %s2769_s2 = sshll.u32 %s2867_s24, 4  ;;  %s2140_s3 = sshra.s32 %s1475_s30, 4  ;;  %s2141_s3 = int_to_ptr.hbm [resolvable:$true] %s2140_s3  ;;  %s1501_s2 = int_to_ptr.vmem [resolvable:$true] %s2769_s2 }
 0x51d   : > { %s2142_s7 = scalar_lea.hbm %s2141_s3, 8  ;;  %s2146_s28 = scalar_lea.hbm %s2838_s8, 16 }
 0x51e   : > { %p2143_p4 = scmp.ne.s32.totalorder %s2141_s3, %s2142_s7  ;;  %p2147_p8 = scmp.lt.s32.totalorder %s2141_s3, %s2838_s8 }
 0x51f   : > { %p2148_p9 = scmp.lt.s32.totalorder %s2146_s28, %s2142_s7 }
 0x520   : > { %p2144_p12 = pnand %p2143_p4, %p2424_p5 }
 0x521   : > { %p2149_p10 = por %p2148_p9, %p2147_p8 }
 0x522   : > { %p2145_p7 = pneg %p2144_p12 }
 0x524   : > { %p2150_p13 = pnand %p2149_p10, %p2145_p7 }
 0x526   : > { %2153 = shalt.err (!%p2150_p13)
}
 0x527   : > { %1801 = dma.vmem_to_hbm [thread:$0]  (%p2424_p5), %s1473_s26, 128, %s1475_s30, %s2731_s1  }
 0x528   : > { %s1502_s27 = sshll.u32 %s1498_s18, 4  ;;  %s2174_s3 = scalar_lea.hbm %s2840_s10, 16  ;;  %s1503_s27 = int_to_ptr.hbm [resolvable:$true] %s1502_s27 }
 0x529   : > { %s2168_s20 = sshra.s32 %s1503_s27, 4  ;;  %s2169_s20 = int_to_ptr.hbm [resolvable:$true] %s2168_s20 }
 0x52a   : > { %s2170_s0 = scalar_lea.hbm %s2169_s20, 8  ;;  %p2175_p1 = scmp.lt.s32.totalorder %s2169_s20, %s2840_s10 }
 0x52b   : > { %p2171_p11 = scmp.ne.s32.totalorder %s2169_s20, %s2170_s0  ;;  %p2176_p3 = scmp.lt.s32.totalorder %s2174_s3, %s2170_s0 }
 0x52d   : > { %p2172_p0 = pnand %p2171_p11, %p2424_p5  ;;  %p2177_p4 = por %p2176_p3, %p2175_p1 }
 0x52f   : > { %p2173_p2 = pneg %p2172_p0 }
 0x531   : > { %p2178_p12 = pnand %p2177_p4, %p2173_p2 }
 0x533   : > { %2181 = shalt.err (!%p2178_p12)
}
 0x534   : > { %1803 = dma.vmem_to_hbm [thread:$0]  (%p2424_p5), %s1501_s2, 128, %s1503_s27, %s2744_s4  }
 0x535   : > { %s1442_s30 = scalar_lea.hbm %s2836_s6, %s2718_s29  ;;  %s445_s18 = scalar_lea.vmem [#allocation11], %s2458_s17 }
 0x536   : > { %s1444_s28 = sshll.u32 %s445_s18, 4  ;;  %s1446_s22 = sshll.u32 %s1442_s30, 4  ;;  %s1445_s28 = int_to_ptr.vmem [resolvable:$true] %s1444_s28  ;;  %s1447_s22 = int_to_ptr.hbm [resolvable:$true] %s1446_s22 }
 0x537   : > { %s1412_s21 = scalar_lea.sflag [#allocation4], %s2455_s19  ;;  %s2196_s20 = sshra.s32 %s1447_s22, 4  ;;  %s2197_s20 = int_to_ptr.hbm [resolvable:$true] %s2196_s20 }
 0x538   : > { %s2198_s0 = scalar_lea.hbm %s2197_s20, 8  ;;  %s2202_s27 = scalar_lea.hbm %s2836_s6, 16 }
 0x539   : > { %p2199_p7 = scmp.ne.s32.totalorder %s2197_s20, %s2198_s0  ;;  %p2203_p10 = scmp.lt.s32.totalorder %s2197_s20, %s2836_s6 }
 0x53a   : > { %p2204_p13 = scmp.lt.s32.totalorder %s2202_s27, %s2198_s0 }
 0x53b   : > { %p2200_p8 = pnand %p2199_p7, %p2424_p5 }
 0x53c   : > { %p2205_p11 = por %p2204_p13, %p2203_p10 }
 0x53d   : > { %p2201_p9 = pneg %p2200_p8 }
 0x53f   : > { %p2206_p0 = pnand %p2205_p11, %p2201_p9 }
 0x58c   : > { %v1407_v49 = vpop.f32.mrf.mxu3 }
 0x58d   : > { %1410 = vst [vmem:[%s445_s18] sm:$0xff] %v1407_v49 }
 0x58e   : > { %2209 = shalt.err (!%p2206_p0)
}
 0x58f   : > { %1799 = dma.vmem_to_hbm [thread:$0]  (%p2424_p5), %s1445_s28, 128, %s1447_s22, %s1412_s21  }
 0x590 PF: > { %s1514_s19 = sand.u32 1, %s2252_s13   ;;  %p2868_p2 = scmp.ge.s32.totalorder %s2264_s16, 2 }
 0x591   : > { %s1515_s7 = scalar_lea.sflag [#allocation4], %s1514_s19 }
 0x592   : > { %p1827_p1 = pnand %p2868_p2, %p2428_p6 }
 0x594   : > { %p1828_p3 = pneg %p1827_p1 }
 0x596   : > { %2239 = dma.done.wait (%p1828_p3), %s1515_s7, 128  }
 0x597   : > { %2241 = vsyncadd (%p1828_p3), %s1515_s7, 4294967168  ;;  %s2869_s24 = sadd.s32 4294967294, %s2264_s16  }
 0x598   : > { %s1524_s3 = sand.u32 1, %s2869_s24  }
 0x599   : > { %s1525_s11 = scalar_lea.sflag [#allocation13], %s1524_s3 }
 0x59a   : > { %2243 = dma.done.wait (%p1828_p3), %s1525_s11, 256  }
 0x59b   : > { %2245 = vsyncadd (%p1828_p3), %s1525_s11, 4294967040  ;;  %s1545_s23 = scalar_lea.sflag [#allocation16], %s1524_s3 }
 0x59c   : > { %2247 = dma.done.wait (%p1828_p3), %s1545_s23, 256  }
 0x59d   : > { %2249 = vsyncadd (%p1828_p3), %s1545_s23, 4294967040  ;;  %s2870_s5 = sld [smem:[#allocation24_spill]]  ;;  %p32_p5 = scmp.ge.s32.totalorder %s2396_s12, 4  }
 0x59e   : > { %s2871_s13 = smov %s2256_s14  ;;  %s2872_s14 = smov %s2260_s15 }
 0x59f   : > { %s2874_s16 = smov %s2396_s12  ;;  %34 = sbr.rel (!%p32_p5) target bundleno = 19 (0x13), region = 169 }
 0x5a3   : > { %s2873_s15 = smov %s2870_s5 }
 0x5a4   :  { %1561 = vsyncpa [#allocation3], 1 }
 0x5a5   :  { %1563 = vsyncpa [#allocation3 + $0x1], 1 }
 0x5a6   :  { %1564 = vsyncpa [#allocation6], 1 }
 0x5a7   :  { %1565 = vsyncpa [#allocation9], 1 }
 0x5a8   :  { %1566 = vsyncpa [#allocation4], 1 }
 0x5a9   :  { %1568 = vsyncpa [#allocation4 + $0x1], 1 }
 0x5aa   :  { %1569 = vsyncpa [#allocation13], 1 }
 0x5ab   :  { %1571 = vsyncpa [#allocation13 + $0x1], 1 }
 0x5ac   :  { %1572 = vsyncpa [#allocation16], 1 }
 0x5ad   :  { %1574 = vsyncpa [#allocation16 + $0x1], 1 }

</bundles_post_ra>
